<compile_context>
chip_gen: v6e
topology: v6e:2x2x1
jax: 0.10.0
libtpu: 0.0.40
codegen_flags: <defaults>
</compile_context>

<pallas_src>
import math
import functools

import jax
import jax.numpy as jnp
from jax import lax
from jax.experimental import pallas as pl
from jax.experimental.pallas import tpu as pltpu

WINDOW_SIZE = 4
IS_ADAPTIVE = False


def _mha_local_kernel(q_ref, kp_ref, kc_ref, kn_ref, vp_ref, vc_ref, vn_ref, kb_ref,
                      wk_ref, bk_ref, wv_ref, bv_ref, wq_ref, bq_ref, wo_ref, bo_ref,
                      out_ref, kk_s, vv_s, ctx_s,
                      *, num_heads, head_size, window_size, edge):
    Tq = q_ref.shape[1]
    E = edge
    K = Tq + 2 * E
    H, hs = num_heads, head_size
    f32 = jnp.float32
    bf16 = jnp.bfloat16

    wk = wk_ref[...]
    bk = bk_ref[...]
    wv = wv_ref[...]
    bv = bv_ref[...]

    def proj(x, w, b):
        # bf16 x bf16 GEMM with f32 MXU accumulation, f32 bias add, bf16 result.
        return (jnp.dot(x.astype(bf16), w, preferred_element_type=f32) + b).astype(bf16)

    # Project each raw window piece straight into the bf16 VMEM scratch window
    # (prev-edge / current tile / next-edge) -- no raw [K, D] concatenate.
    kk_s[0:E, :] = proj(kp_ref[0], wk, bk)
    kk_s[E:E + Tq, :] = proj(kc_ref[0], wk, bk)
    kk_s[E + Tq:K, :] = proj(kn_ref[0], wk, bk)
    vv_s[0:E, :] = proj(vp_ref[0], wv, bv)
    vv_s[E:E + Tq, :] = proj(vc_ref[0], wv, bv)
    vv_s[E + Tq:K, :] = proj(vn_ref[0], wv, bv)

    # Query projection (1/sqrt(head_size) already folded into wq/bq).
    qqb = proj(q_ref[0], wq_ref[...], bq_ref[...])                     # [Tq, D] bf16

    # Additive score bias [Tq, K]: tile-relative band mask + per-key padding /
    # out-of-range bias precomputed by the wrapper (0 keep, -1e9 drop).
    row = lax.broadcasted_iota(jnp.int32, (Tq, K), 0)                  # query offset
    col = lax.broadcasted_iota(jnp.int32, (Tq, K), 1)                  # key offset
    band = jnp.abs(col - row - E) <= (window_size - 1)
    bias = jnp.where(band, 0.0, -1e9) + kb_ref[0, 0]                   # [Tq,K] + [1,K]

    dn_qk = (((1,), (1,)), ((), ()))    # q[Tq,hs] . k[K,hs]^T -> [Tq, K]
    dn_pv = (((1,), (0,)), ((), ()))    # p[Tq,K]  . v[K,hs]   -> [Tq, hs]

    for h in range(H):
        sl = slice(h * hs, (h + 1) * hs)
        s = lax.dot_general(qqb[:, sl], kk_s[:, sl], dn_qk,
                            preferred_element_type=f32) + bias          # [Tq, K]
        m = jnp.max(s, axis=-1, keepdims=True)
        p = jnp.exp(s - m)                                              # unnormalized
        l = jnp.sum(p, axis=-1, keepdims=True)                          # [Tq, 1]
        ctx = lax.dot_general(p.astype(bf16), vv_s[:, sl], dn_pv,
                              preferred_element_type=f32)               # [Tq, hs]
        # Deferred softmax normalization (EUP reciprocal); write straight into the
        # lane-dense ctx scratch (no per-head concatenate).
        ctx_s[:, sl] = ctx * pl.reciprocal(l, approx=True)

    out = jnp.dot(ctx_s[...].astype(bf16), wo_ref[...],
                  preferred_element_type=f32) + bo_ref[...]
    out_ref[0] = out.astype(out_ref.dtype)


def prepare_params(params, *, num_heads):
    """One-time constant transform:
       * fold 1/sqrt(head_size) into the q projection,
       * cast the four [D, D] projection weights to bf16 (halves weight HBM/DMA/VMEM).
       Biases stay f32 (negligible size, slightly better accuracy).
       The kernel REQUIRES params prepared by this function."""
    wk, bk, wv, bv, wq, bq, wo, bo = params
    head_size = wq.shape[1] // num_heads
    s = 1.0 / math.sqrt(head_size)
    cast = lambda w: w.astype(jnp.bfloat16)
    return (cast(wk), bk, cast(wv), bv, cast(wq * s), bq * s, cast(wo), bo)


def _edge_rows(q_tile, window_size):
    """Sublane-aligned edge rows taken from each neighbouring tile."""
    e = max(8, ((window_size - 1 + 7) // 8) * 8)
    if e > q_tile or q_tile % e != 0:
        e = q_tile
    return e


def _vmem_budget_and_tile_cap():
    """Generation-aware VMEM budget & query-tile cap.

    v7x-class parts have 64 MiB/TC -> 48 MiB budget, Tq <= 256 (headroom for
    internal scratch); v5e/v6e have 128 MiB physical -> ~100 MiB, Tq <= 512."""
    vmem_bytes = 128 * 1024 * 1024
    try:
        vmem_bytes = int(pltpu.get_tpu_info().vmem_capacity_bytes)
    except Exception:
        pass
    if vmem_bytes <= 64 * 1024 * 1024:
        return 48 * 1024 * 1024, 256
    return 100 * 1024 * 1024, 512


def _step_vmem_bytes(q_tile, edge, d):
    """Rough per-grid-step VMEM estimate (double-buffered blocks + scratch + weights)."""
    k_win = q_tile + 2 * edge
    act = 2 * 4 * (2 * q_tile * d + 2 * k_win * d)     # f32 q/out + k/v window blocks
    scratch = 2 * 2 * k_win * d + 4 * q_tile * d       # bf16 kk/vv + f32 ctx
    weights = 2 * 4 * 2 * d * d + 2 * 4 * 4 * d        # bf16 weights (<=2 bufs) + biases
    return act + scratch + weights


def _choose_q_tile(M, D, B, window_size, tile_cap, vmem_budget):
    divisors = [d for d in range(8, min(M, tile_cap) + 1, 8) if M % d == 0]
    if not divisors:
        # TODO(synk): pad M to a multiple of 8/128 in the wrapper (padded rows masked
        # via kb) instead of falling back to a single whole-sequence block.
        return M
    fitting = [d for d in divisors
               if _step_vmem_bytes(d, _edge_rows(d, window_size), D) <= 0.75 * vmem_budget]
    cands = fitting if fitting else divisors[:1]
    # Prefer an even total grid so both v7x TensorCores get balanced shards.
    even = [d for d in cands if (B * (M // d)) % 2 == 0]
    return max(even) if even else max(cands)


def _const_block_spec(shape, index_map):
    """Spec for weights/biases: constant block index across the whole grid.
    Request a single pipeline buffer (fetched once -> halves their VMEM reservation);
    fall back gracefully if pipeline_mode / Buffered is unavailable."""
    try:
        return pl.BlockSpec(shape, index_map, pipeline_mode=pl.Buffered(1))
    except Exception:  # pragma: no cover - older jax without pipeline_mode
        return pl.BlockSpec(shape, index_map)


def multi_headed_local_attention(k, v, q, mask, params, *, num_heads, window_size,
                                 q_tile=None, out_dtype=jnp.float32):
    """k, v, q: [B, M, D]; mask: [B, 1, M] int32 (nonzero = keep).

    `params` must come from prepare_params (bf16 weights, scale folded into wq/bq).
    """
    B, M, D = k.shape
    assert D % num_heads == 0
    head_size = D // num_heads
    wk, bk, wv, bv, wq, bq, wo, bo = params

    vmem_budget, tile_cap = _vmem_budget_and_tile_cap()
    if q_tile is None:
        q_tile = _choose_q_tile(M, D, B, window_size, tile_cap, vmem_budget)
    Tq = q_tile
    assert M % Tq == 0, "seq length must be a multiple of q_tile"
    assert Tq % 8 == 0 or Tq == M
    nQT = M // Tq

    E = _edge_rows(Tq, window_size)
    assert nQT == 1 or (window_size - 1) <= E, "query tile too small for the window"
    K = Tq + 2 * E
    r = Tq // E          # E-sized blocks per query tile
    nEB = M // E         # E-sized blocks in the whole sequence

    # Pre-windowed additive key bias [B, nQT, 1, K]: 0 keep / -1e9 drop.  Also masks
    # the out-of-range (clamped duplicate) edge blocks, so the kernel needs no
    # validity logic.
    kb = jnp.where(mask[:, 0, :] != 0, 0.0, -1e9).astype(jnp.float32)       # [B, M]
    kb = jnp.pad(kb, ((0, 0), (E, E)), constant_values=-1e9)                # [B, M+2E]
    kb = jnp.stack([kb[:, t * Tq: t * Tq + K] for t in range(nQT)], axis=1)
    kb = kb.reshape(B, nQT, 1, K)

    kernel = functools.partial(_mha_local_kernel, num_heads=num_heads,
                               head_size=head_size, window_size=window_size, edge=E)

    qo_spec = pl.BlockSpec((1, Tq, D), lambda b, t: (b, t, 0))
    cur_spec = pl.BlockSpec((1, Tq, D), lambda b, t: (b, t, 0))
    prev_spec = pl.BlockSpec((1, E, D), lambda b, t: (b, jnp.maximum(t * r - 1, 0), 0))
    next_spec = pl.BlockSpec((1, E, D),
                             lambda b, t: (b, jnp.minimum((t + 1) * r, nEB - 1), 0))
    kb_spec = pl.BlockSpec((1, 1, 1, K), lambda b, t: (b, t, 0, 0))
    w_spec = _const_block_spec((D, D), lambda b, t: (0, 0))
    b_spec = _const_block_spec((1, D), lambda b, t: (0, 0))

    cost = pl.CostEstimate(
        flops=int(B * M * (8 * D * D + 4 * K * D)),
        transcendentals=int(B * M * K * num_heads),
        bytes_accessed=int(4 * (2 * B * M * D + 2 * B * (M + 2 * nQT * E) * D)
                           + 8 * D * D + 16 * D + 4 * B * nQT * K))

    return pl.pallas_call(
        kernel,
        out_shape=jax.ShapeDtypeStruct((B, M, D), out_dtype),
        grid=(B, nQT),
        in_specs=[qo_spec,
                  prev_spec, cur_spec, next_spec,      # k window tiles
                  prev_spec, cur_spec, next_spec,      # v window tiles
                  kb_spec,
                  w_spec, b_spec, w_spec, b_spec, w_spec, b_spec, w_spec, b_spec],
        out_specs=qo_spec,
        scratch_shapes=[pltpu.VMEM((K, D), jnp.bfloat16),     # projected k window
                        pltpu.VMEM((K, D), jnp.bfloat16),     # projected v window
                        pltpu.VMEM((Tq, D), jnp.float32)],    # per-head context
        compiler_params=pltpu.CompilerParams(
            dimension_semantics=("parallel", "parallel"),
            vmem_limit_bytes=vmem_budget),
        cost_estimate=cost,
    )(q, k, k, k, v, v, v, kb, wk, bk, wv, bv, wq, bq, wo, bo)


def _reference(k, v, q, mask, params, *, num_heads, window_size):
    """Pure-JAX f32 reference mirroring the PyTorch forward (eval, is_adaptive=False)."""
    B, M, D = k.shape
    hs = D // num_heads
    wk, bk, wv, bv, wq, bq, wo, bo = params

    kk = (k @ wk + bk).reshape(B, M, num_heads, hs).transpose(0, 2, 1, 3)
    vv = (v @ wv + bv).reshape(B, M, num_heads, hs).transpose(0, 2, 1, 3)
    qq = (q @ wq + bq).reshape(B, M, num_heads, hs).transpose(0, 2, 1, 3)
    qq = qq / math.sqrt(hs)
    scores = jnp.einsum('bhqd,bhkd->bhqk', qq, kk)

    i = jnp.arange(M)[:, None]
    j = jnp.arange(M)[None, :]
    band = (jnp.abs(j - i) <= (window_size - 1))[None, None]
    scores = jnp.where(band, scores, -1e9)
    scores = jnp.where((mask != 0)[:, None, :, :], scores, -jnp.inf)

    attn = jax.nn.softmax(scores, axis=-1)
    ctx = jnp.einsum('bhqk,bhkd->bhqd', attn, vv)
    ctx = ctx.transpose(0, 2, 1, 3).reshape(B, M, D)
    return ctx @ wo + bo


def _init_params(key, size):
    """Deterministic Linear-style init: weights [D_in, D_out], biases [1, D_out]."""
    bound = 1.0 / math.sqrt(size)
    keys = jax.random.split(key, 8)
    mk = lambda kk: jax.random.uniform(kk, (size, size), jnp.float32, -bound, bound)
    mb = lambda kk: jax.random.uniform(kk, (1, size), jnp.float32, -bound, bound)
    return (mk(keys[0]), mb(keys[1]),   # k_layer
            mk(keys[2]), mb(keys[3]),   # v_layer
            mk(keys[4]), mb(keys[5]),   # q_layer
            mk(keys[6]), mb(keys[7]))   # output_layer


if __name__ == "__main__":
    B, M, D, H = 2, 16, 32, 4

    root = jax.random.PRNGKey(0)
    kp_, kk_, kv_, kq_ = jax.random.split(root, 4)

    params = _init_params(kp_, D)
    k = jax.random.normal(kk_, (B, M, D), jnp.float32)
    v = jax.random.normal(kv_, (B, M, D), jnp.float32)
    q = jax.random.normal(kq_, (B, M, D), jnp.float32)

    # Padding mask [B, 1, M]: batch 0 fully valid, batch 1 valid up to length 13.
    lengths = jnp.array([M, 13], dtype=jnp.int32)
    mask = (jnp.arange(M)[None, None, :] < lengths[:, None, None]).astype(jnp.int32)

    prepared = prepare_params(params, num_heads=H)
    ref = _reference(k, v, q, mask, params, num_heads=H, window_size=WINDOW_SIZE)

    # Multi-tile path (q_tile=8 -> two query tiles with edge blocks).
    out = multi_headed_local_attention(k, v, q, mask, prepared,
                                       num_heads=H, window_size=WINDOW_SIZE, q_tile=8)
    out = jax.block_until_ready(out)
    assert out.shape == (B, M, D)
    err = float(jnp.max(jnp.abs(out - ref)))
    # bf16 weights + bf16 attention matmuls + approx reciprocal vs pure-f32 reference.
    assert jnp.allclose(out, ref, atol=2.5e-2, rtol=2.5e-2), f"max abs err = {err}"

    # Auto tile-selection path (generation-aware).
    out2 = multi_headed_local_attention(k, v, q, mask, prepared,
                                        num_heads=H, window_size=WINDOW_SIZE)
    out2 = jax.block_until_ready(out2)
    err2 = float(jnp.max(jnp.abs(out2 - ref)))
    assert jnp.allclose(out2, ref, atol=2.5e-2, rtol=2.5e-2), f"max abs err = {err2}"

    print("KERNEL_OK")
</pallas_src>

<mosaic_0001>
module attributes {stable_mosaic.version = 11 : i64} {
  func.func @_mha_local_kernel(%arg0: i32, %arg1: i32, %arg2: memref<1x8x32xf32, #tpu.memory_space<vmem>>, %arg3: memref<1x8x32xf32, #tpu.memory_space<vmem>>, %arg4: memref<1x8x32xf32, #tpu.memory_space<vmem>>, %arg5: memref<1x8x32xf32, #tpu.memory_space<vmem>>, %arg6: memref<1x8x32xf32, #tpu.memory_space<vmem>>, %arg7: memref<1x8x32xf32, #tpu.memory_space<vmem>>, %arg8: memref<1x8x32xf32, #tpu.memory_space<vmem>>, %arg9: memref<1x1x1x24xf32, #tpu.memory_space<vmem>>, %arg10: memref<32x32xbf16, #tpu.memory_space<vmem>>, %arg11: memref<1x32xf32, #tpu.memory_space<vmem>>, %arg12: memref<32x32xbf16, #tpu.memory_space<vmem>>, %arg13: memref<1x32xf32, #tpu.memory_space<vmem>>, %arg14: memref<32x32xbf16, #tpu.memory_space<vmem>>, %arg15: memref<1x32xf32, #tpu.memory_space<vmem>>, %arg16: memref<32x32xbf16, #tpu.memory_space<vmem>>, %arg17: memref<1x32xf32, #tpu.memory_space<vmem>>, %arg18: memref<1x8x32xf32, #tpu.memory_space<vmem>>, %arg19: memref<24x32xbf16, #tpu.memory_space<vmem>>, %arg20: memref<24x32xbf16, #tpu.memory_space<vmem>>, %arg21: memref<8x32xf32, #tpu.memory_space<vmem>>) attributes {dimension_semantics = [#tpu.dimension_semantics<parallel>, #tpu.dimension_semantics<parallel>], iteration_bounds = array<i64: 2, 2>, scalar_prefetch = 0 : i64, scratch_operands = 3 : i64, tpu.core_type = #tpu.core_type<tc>, window_params = [{transform_indices = @transform_0, window_bounds = array<i64: 1, 8, 32>}, {transform_indices = @transform_1, window_bounds = array<i64: 1, 8, 32>}, {transform_indices = @transform_2, window_bounds = array<i64: 1, 8, 32>}, {transform_indices = @transform_3, window_bounds = array<i64: 1, 8, 32>}, {transform_indices = @transform_4, window_bounds = array<i64: 1, 8, 32>}, {transform_indices = @transform_5, window_bounds = array<i64: 1, 8, 32>}, {transform_indices = @transform_6, window_bounds = array<i64: 1, 8, 32>}, {transform_indices = @transform_7, window_bounds = array<i64: 1, 1, 1, 24>}, {pipeline_mode = #tpu.pipeline_mode<synchronous>, transform_indices = @transform_8, window_bounds = array<i64: 32, 32>}, {pipeline_mode = #tpu.pipeline_mode<synchronous>, transform_indices = @transform_9, window_bounds = array<i64: 1, 32>}, {pipeline_mode = #tpu.pipeline_mode<synchronous>, transform_indices = @transform_10, window_bounds = array<i64: 32, 32>}, {pipeline_mode = #tpu.pipeline_mode<synchronous>, transform_indices = @transform_11, window_bounds = array<i64: 1, 32>}, {pipeline_mode = #tpu.pipeline_mode<synchronous>, transform_indices = @transform_12, window_bounds = array<i64: 32, 32>}, {pipeline_mode = #tpu.pipeline_mode<synchronous>, transform_indices = @transform_13, window_bounds = array<i64: 1, 32>}, {pipeline_mode = #tpu.pipeline_mode<synchronous>, transform_indices = @transform_14, window_bounds = array<i64: 32, 32>}, {pipeline_mode = #tpu.pipeline_mode<synchronous>, transform_indices = @transform_15, window_bounds = array<i64: 1, 32>}, {transform_indices = @transform_16, window_bounds = array<i64: 1, 8, 32>}]} {
    %c0 = arith.constant 0 : index
    %c0_0 = arith.constant 0 : index
    %0 = vector.load %arg10[%c0, %c0_0] : memref<32x32xbf16, #tpu.memory_space<vmem>>, vector<32x32xbf16>
    %c0_1 = arith.constant 0 : index
    %c0_2 = arith.constant 0 : index
    %1 = vector.load %arg11[%c0_1, %c0_2] : memref<1x32xf32, #tpu.memory_space<vmem>>, vector<1x32xf32>
    %c0_3 = arith.constant 0 : index
    %c0_4 = arith.constant 0 : index
    %2 = vector.load %arg12[%c0_3, %c0_4] : memref<32x32xbf16, #tpu.memory_space<vmem>>, vector<32x32xbf16>
    %c0_5 = arith.constant 0 : index
    %c0_6 = arith.constant 0 : index
    %3 = vector.load %arg13[%c0_5, %c0_6] : memref<1x32xf32, #tpu.memory_space<vmem>>, vector<1x32xf32>
    %c0_7 = arith.constant 0 : index
    %c0_8 = arith.constant 0 : index
    %c0_9 = arith.constant 0 : index
    %4 = vector.load %arg3[%c0_7, %c0_8, %c0_9] : memref<1x8x32xf32, #tpu.memory_space<vmem>>, vector<1x8x32xf32>
    %5 = vector.shape_cast %4 : vector<1x8x32xf32> to vector<8x32xf32>
    %6 = arith.truncf %5 : vector<8x32xf32> to vector<8x32xbf16>
    %cst = arith.constant dense<0.000000e+00> : vector<8x32xf32>
    %7 = tpu.matmul %6, %0, %cst {dimension_numbers = #tpu.dot_dimension_numbers<[1], [0], [0], [1], [0, 0, 1, 1], [], []>} : vector<8x32xbf16>, vector<32x32xbf16>, vector<8x32xf32> -> vector<8x32xf32>
    %8 = vector.broadcast %1 : vector<1x32xf32> to vector<8x32xf32>
    %9 = arith.addf %7, %8 : vector<8x32xf32>
    %10 = arith.truncf %9 : vector<8x32xf32> to vector<8x32xbf16>
    %c0_10 = arith.constant 0 : index
    %c0_11 = arith.constant 0 : index
    %11 = vector.load %arg19[%c0_10, %c0_11] : memref<24x32xbf16, #tpu.memory_space<vmem>>, vector<8x32xbf16>
    tpu.vector_store %arg19[%c0_10, %c0_11], %10 {strides = array<i32>} : memref<24x32xbf16, #tpu.memory_space<vmem>>, vector<8x32xbf16>,
    %c0_12 = arith.constant 0 : index
    %c0_13 = arith.constant 0 : index
    %c0_14 = arith.constant 0 : index
    %12 = vector.load %arg4[%c0_12, %c0_13, %c0_14] : memref<1x8x32xf32, #tpu.memory_space<vmem>>, vector<1x8x32xf32>
    %13 = vector.shape_cast %12 : vector<1x8x32xf32> to vector<8x32xf32>
    %14 = arith.truncf %13 : vector<8x32xf32> to vector<8x32xbf16>
    %cst_15 = arith.constant dense<0.000000e+00> : vector<8x32xf32>
    %15 = tpu.matmul %14, %0, %cst_15 {dimension_numbers = #tpu.dot_dimension_numbers<[1], [0], [0], [1], [0, 0, 1, 1], [], []>} : vector<8x32xbf16>, vector<32x32xbf16>, vector<8x32xf32> -> vector<8x32xf32>
    %16 = vector.broadcast %1 : vector<1x32xf32> to vector<8x32xf32>
    %17 = arith.addf %15, %16 : vector<8x32xf32>
    %18 = arith.truncf %17 : vector<8x32xf32> to vector<8x32xbf16>
    %c8 = arith.constant 8 : index
    %c0_16 = arith.constant 0 : index
    %19 = vector.load %arg19[%c8, %c0_16] : memref<24x32xbf16, #tpu.memory_space<vmem>>, vector<8x32xbf16>
    tpu.vector_store %arg19[%c8, %c0_16], %18 {strides = array<i32>} : memref<24x32xbf16, #tpu.memory_space<vmem>>, vector<8x32xbf16>,
    %c0_17 = arith.constant 0 : index
    %c0_18 = arith.constant 0 : index
    %c0_19 = arith.constant 0 : index
    %20 = vector.load %arg5[%c0_17, %c0_18, %c0_19] : memref<1x8x32xf32, #tpu.memory_space<vmem>>, vector<1x8x32xf32>
    %21 = vector.shape_cast %20 : vector<1x8x32xf32> to vector<8x32xf32>
    %22 = arith.truncf %21 : vector<8x32xf32> to vector<8x32xbf16>
    %cst_20 = arith.constant dense<0.000000e+00> : vector<8x32xf32>
    %23 = tpu.matmul %22, %0, %cst_20 {dimension_numbers = #tpu.dot_dimension_numbers<[1], [0], [0], [1], [0, 0, 1, 1], [], []>} : vector<8x32xbf16>, vector<32x32xbf16>, vector<8x32xf32> -> vector<8x32xf32>
    %24 = vector.broadcast %1 : vector<1x32xf32> to vector<8x32xf32>
    %25 = arith.addf %23, %24 : vector<8x32xf32>
    %26 = arith.truncf %25 : vector<8x32xf32> to vector<8x32xbf16>
    %c16 = arith.constant 16 : index
    %c0_21 = arith.constant 0 : index
    %27 = vector.load %arg19[%c16, %c0_21] : memref<24x32xbf16, #tpu.memory_space<vmem>>, vector<8x32xbf16>
    tpu.vector_store %arg19[%c16, %c0_21], %26 {strides = array<i32>} : memref<24x32xbf16, #tpu.memory_space<vmem>>, vector<8x32xbf16>,
    %c0_22 = arith.constant 0 : index
    %c0_23 = arith.constant 0 : index
    %c0_24 = arith.constant 0 : index
    %28 = vector.load %arg6[%c0_22, %c0_23, %c0_24] : memref<1x8x32xf32, #tpu.memory_space<vmem>>, vector<1x8x32xf32>
    %29 = vector.shape_cast %28 : vector<1x8x32xf32> to vector<8x32xf32>
    %30 = arith.truncf %29 : vector<8x32xf32> to vector<8x32xbf16>
    %cst_25 = arith.constant dense<0.000000e+00> : vector<8x32xf32>
    %31 = tpu.matmul %30, %2, %cst_25 {dimension_numbers = #tpu.dot_dimension_numbers<[1], [0], [0], [1], [0, 0, 1, 1], [], []>} : vector<8x32xbf16>, vector<32x32xbf16>, vector<8x32xf32> -> vector<8x32xf32>
    %32 = vector.broadcast %3 : vector<1x32xf32> to vector<8x32xf32>
    %33 = arith.addf %31, %32 : vector<8x32xf32>
    %34 = arith.truncf %33 : vector<8x32xf32> to vector<8x32xbf16>
    %c0_26 = arith.constant 0 : index
    %c0_27 = arith.constant 0 : index
    %35 = vector.load %arg20[%c0_26, %c0_27] : memref<24x32xbf16, #tpu.memory_space<vmem>>, vector<8x32xbf16>
    tpu.vector_store %arg20[%c0_26, %c0_27], %34 {strides = array<i32>} : memref<24x32xbf16, #tpu.memory_space<vmem>>, vector<8x32xbf16>,
    %c0_28 = arith.constant 0 : index
    %c0_29 = arith.constant 0 : index
    %c0_30 = arith.constant 0 : index
    %36 = vector.load %arg7[%c0_28, %c0_29, %c0_30] : memref<1x8x32xf32, #tpu.memory_space<vmem>>, vector<1x8x32xf32>
    %37 = vector.shape_cast %36 : vector<1x8x32xf32> to vector<8x32xf32>
    %38 = arith.truncf %37 : vector<8x32xf32> to vector<8x32xbf16>
    %cst_31 = arith.constant dense<0.000000e+00> : vector<8x32xf32>
    %39 = tpu.matmul %38, %2, %cst_31 {dimension_numbers = #tpu.dot_dimension_numbers<[1], [0], [0], [1], [0, 0, 1, 1], [], []>} : vector<8x32xbf16>, vector<32x32xbf16>, vector<8x32xf32> -> vector<8x32xf32>
    %40 = vector.broadcast %3 : vector<1x32xf32> to vector<8x32xf32>
    %41 = arith.addf %39, %40 : vector<8x32xf32>
    %42 = arith.truncf %41 : vector<8x32xf32> to vector<8x32xbf16>
    %c8_32 = arith.constant 8 : index
    %c0_33 = arith.constant 0 : index
    %43 = vector.load %arg20[%c8_32, %c0_33] : memref<24x32xbf16, #tpu.memory_space<vmem>>, vector<8x32xbf16>
    tpu.vector_store %arg20[%c8_32, %c0_33], %42 {strides = array<i32>} : memref<24x32xbf16, #tpu.memory_space<vmem>>, vector<8x32xbf16>,
    %c0_34 = arith.constant 0 : index
    %c0_35 = arith.constant 0 : index
    %c0_36 = arith.constant 0 : index
    %44 = vector.load %arg8[%c0_34, %c0_35, %c0_36] : memref<1x8x32xf32, #tpu.memory_space<vmem>>, vector<1x8x32xf32>
    %45 = vector.shape_cast %44 : vector<1x8x32xf32> to vector<8x32xf32>
    %46 = arith.truncf %45 : vector<8x32xf32> to vector<8x32xbf16>
    %cst_37 = arith.constant dense<0.000000e+00> : vector<8x32xf32>
    %47 = tpu.matmul %46, %2, %cst_37 {dimension_numbers = #tpu.dot_dimension_numbers<[1], [0], [0], [1], [0, 0, 1, 1], [], []>} : vector<8x32xbf16>, vector<32x32xbf16>, vector<8x32xf32> -> vector<8x32xf32>
    %48 = vector.broadcast %3 : vector<1x32xf32> to vector<8x32xf32>
    %49 = arith.addf %47, %48 : vector<8x32xf32>
    %50 = arith.truncf %49 : vector<8x32xf32> to vector<8x32xbf16>
    %c16_38 = arith.constant 16 : index
    %c0_39 = arith.constant 0 : index
    %51 = vector.load %arg20[%c16_38, %c0_39] : memref<24x32xbf16, #tpu.memory_space<vmem>>, vector<8x32xbf16>
    tpu.vector_store %arg20[%c16_38, %c0_39], %50 {strides = array<i32>} : memref<24x32xbf16, #tpu.memory_space<vmem>>, vector<8x32xbf16>,
    %c0_40 = arith.constant 0 : index
    %c0_41 = arith.constant 0 : index
    %c0_42 = arith.constant 0 : index
    %52 = vector.load %arg2[%c0_40, %c0_41, %c0_42] : memref<1x8x32xf32, #tpu.memory_space<vmem>>, vector<1x8x32xf32>
    %53 = vector.shape_cast %52 : vector<1x8x32xf32> to vector<8x32xf32>
    %c0_43 = arith.constant 0 : index
    %c0_44 = arith.constant 0 : index
    %54 = vector.load %arg14[%c0_43, %c0_44] : memref<32x32xbf16, #tpu.memory_space<vmem>>, vector<32x32xbf16>
    %c0_45 = arith.constant 0 : index
    %c0_46 = arith.constant 0 : index
    %55 = vector.load %arg15[%c0_45, %c0_46] : memref<1x32xf32, #tpu.memory_space<vmem>>, vector<1x32xf32>
    %56 = arith.truncf %53 : vector<8x32xf32> to vector<8x32xbf16>
    %cst_47 = arith.constant dense<0.000000e+00> : vector<8x32xf32>
    %57 = tpu.matmul %56, %54, %cst_47 {dimension_numbers = #tpu.dot_dimension_numbers<[1], [0], [0], [1], [0, 0, 1, 1], [], []>} : vector<8x32xbf16>, vector<32x32xbf16>, vector<8x32xf32> -> vector<8x32xf32>
    %58 = vector.broadcast %55 : vector<1x32xf32> to vector<8x32xf32>
    %59 = arith.addf %57, %58 : vector<8x32xf32>
    %60 = arith.truncf %59 : vector<8x32xf32> to vector<8x32xbf16>
    %61 = tpu.iota {dimensions = array<i32: 0>} : vector<8x24xi32>
    %62 = tpu.iota {dimensions = array<i32: 1>} : vector<8x24xi32>
    %63 = arith.subi %62, %61 : vector<8x24xi32>
    %c8_i32 = arith.constant 8 : i32
    %64 = vector.broadcast %c8_i32 : i32 to vector<8x24xi32>
    %65 = arith.subi %63, %64 : vector<8x24xi32>
    %66 = math.absi %65 : vector<8x24xi32>
    %c3_i32 = arith.constant 3 : i32
    %67 = vector.broadcast %c3_i32 : i32 to vector<8x24xi32>
    %68 = arith.cmpi sle, %66, %67 : vector<8x24xi32>
    %cst_48 = arith.constant 0.000000e+00 : f32
    %cst_49 = arith.constant -1.000000e+09 : f32
    %69 = vector.broadcast %cst_48 : f32 to vector<8x24xf32>
    %70 = vector.broadcast %cst_49 : f32 to vector<8x24xf32>
    %71 = arith.select %68, %69, %70 : vector<8x24xi1>, vector<8x24xf32>
    %c0_50 = arith.constant 0 : index
    %c0_51 = arith.constant 0 : index
    %c0_52 = arith.constant 0 : index
    %c0_53 = arith.constant 0 : index
    %72 = vector.load %arg9[%c0_50, %c0_51, %c0_52, %c0_53] : memref<1x1x1x24xf32, #tpu.memory_space<vmem>>, vector<1x1x1x24xf32>
    %73 = vector.shape_cast %72 : vector<1x1x1x24xf32> to vector<1x24xf32>
    %74 = vector.broadcast %73 : vector<1x24xf32> to vector<8x24xf32>
    %75 = arith.addf %71, %74 : vector<8x24xf32>
    %76 = vector.extract_strided_slice %60 {offsets = [0, 0], sizes = [8, 8], strides = [1, 1]} : vector<8x32xbf16> to vector<8x8xbf16>
    %c0_54 = arith.constant 0 : index
    %c0_55 = arith.constant 0 : index
    %77 = vector.load %arg19[%c0_54, %c0_55] : memref<24x32xbf16, #tpu.memory_space<vmem>>, vector<24x8xbf16>
    %cst_56 = arith.constant dense<0.000000e+00> : vector<8x24xf32>
    %78 = tpu.matmul %76, %77, %cst_56 {dimension_numbers = #tpu.dot_dimension_numbers<[1], [1], [0], [0], [0, 0, 1, 0], [], []>} : vector<8x8xbf16>, vector<24x8xbf16>, vector<8x24xf32> -> vector<8x24xf32>
    %79 = arith.addf %78, %75 : vector<8x24xf32>
    %cst_57 = arith.constant dense<0xFF800000> : vector<8xf32>
    %80 = vector.multi_reduction <maximumf>, %79, %cst_57 [1] : vector<8x24xf32> to vector<8xf32>
    %81 = vector.shape_cast %80 : vector<8xf32> to vector<8x1xf32>
    %82 = vector.broadcast %81 : vector<8x1xf32> to vector<8x24xf32>
    %83 = arith.subf %79, %82 : vector<8x24xf32>
    %84 = math.exp %83 : vector<8x24xf32>
    %cst_58 = arith.constant dense<0.000000e+00> : vector<8xf32>
    %85 = vector.multi_reduction <add>, %84, %cst_58 [1] : vector<8x24xf32> to vector<8xf32>
    %86 = vector.shape_cast %85 : vector<8xf32> to vector<8x1xf32>
    %87 = arith.truncf %84 : vector<8x24xf32> to vector<8x24xbf16>
    %c0_59 = arith.constant 0 : index
    %c0_60 = arith.constant 0 : index
    %88 = vector.load %arg20[%c0_59, %c0_60] : memref<24x32xbf16, #tpu.memory_space<vmem>>, vector<24x8xbf16>
    %cst_61 = arith.constant dense<0.000000e+00> : vector<8x8xf32>
    %89 = tpu.matmul %87, %88, %cst_61 {dimension_numbers = #tpu.dot_dimension_numbers<[1], [0], [0], [1], [0, 0, 1, 1], [], []>} : vector<8x24xbf16>, vector<24x8xbf16>, vector<8x8xf32> -> vector<8x8xf32>
    %90 = tpu.reciprocal %86 {approx = true} : vector<8x1xf32> -> vector<8x1xf32>
    %91 = vector.broadcast %90 : vector<8x1xf32> to vector<8x8xf32>
    %92 = arith.mulf %89, %91 : vector<8x8xf32>
    %c0_62 = arith.constant 0 : index
    %c0_63 = arith.constant 0 : index
    %93 = vector.load %arg21[%c0_62, %c0_63] : memref<8x32xf32, #tpu.memory_space<vmem>>, vector<8x8xf32>
    tpu.vector_store %arg21[%c0_62, %c0_63], %92 {strides = array<i32>} : memref<8x32xf32, #tpu.memory_space<vmem>>, vector<8x8xf32>,
    %94 = vector.extract_strided_slice %60 {offsets = [0, 8], sizes = [8, 8], strides = [1, 1]} : vector<8x32xbf16> to vector<8x8xbf16>
    %c0_64 = arith.constant 0 : index
    %c8_65 = arith.constant 8 : index
    %95 = vector.load %arg19[%c0_64, %c8_65] : memref<24x32xbf16, #tpu.memory_space<vmem>>, vector<24x8xbf16>
    %cst_66 = arith.constant dense<0.000000e+00> : vector<8x24xf32>
    %96 = tpu.matmul %94, %95, %cst_66 {dimension_numbers = #tpu.dot_dimension_numbers<[1], [1], [0], [0], [0, 0, 1, 0], [], []>} : vector<8x8xbf16>, vector<24x8xbf16>, vector<8x24xf32> -> vector<8x24xf32>
    %97 = arith.addf %96, %75 : vector<8x24xf32>
    %cst_67 = arith.constant dense<0xFF800000> : vector<8xf32>
    %98 = vector.multi_reduction <maximumf>, %97, %cst_67 [1] : vector<8x24xf32> to vector<8xf32>
    %99 = vector.shape_cast %98 : vector<8xf32> to vector<8x1xf32>
    %100 = vector.broadcast %99 : vector<8x1xf32> to vector<8x24xf32>
    %101 = arith.subf %97, %100 : vector<8x24xf32>
    %102 = math.exp %101 : vector<8x24xf32>
    %cst_68 = arith.constant dense<0.000000e+00> : vector<8xf32>
    %103 = vector.multi_reduction <add>, %102, %cst_68 [1] : vector<8x24xf32> to vector<8xf32>
    %104 = vector.shape_cast %103 : vector<8xf32> to vector<8x1xf32>
    %105 = arith.truncf %102 : vector<8x24xf32> to vector<8x24xbf16>
    %c0_69 = arith.constant 0 : index
    %c8_70 = arith.constant 8 : index
    %106 = vector.load %arg20[%c0_69, %c8_70] : memref<24x32xbf16, #tpu.memory_space<vmem>>, vector<24x8xbf16>
    %cst_71 = arith.constant dense<0.000000e+00> : vector<8x8xf32>
    %107 = tpu.matmul %105, %106, %cst_71 {dimension_numbers = #tpu.dot_dimension_numbers<[1], [0], [0], [1], [0, 0, 1, 1], [], []>} : vector<8x24xbf16>, vector<24x8xbf16>, vector<8x8xf32> -> vector<8x8xf32>
    %108 = tpu.reciprocal %104 {approx = true} : vector<8x1xf32> -> vector<8x1xf32>
    %109 = vector.broadcast %108 : vector<8x1xf32> to vector<8x8xf32>
    %110 = arith.mulf %107, %109 : vector<8x8xf32>
    %c0_72 = arith.constant 0 : index
    %c8_73 = arith.constant 8 : index
    %111 = vector.load %arg21[%c0_72, %c8_73] : memref<8x32xf32, #tpu.memory_space<vmem>>, vector<8x8xf32>
    tpu.vector_store %arg21[%c0_72, %c8_73], %110 {strides = array<i32>} : memref<8x32xf32, #tpu.memory_space<vmem>>, vector<8x8xf32>,
    %112 = vector.extract_strided_slice %60 {offsets = [0, 16], sizes = [8, 8], strides = [1, 1]} : vector<8x32xbf16> to vector<8x8xbf16>
    %c0_74 = arith.constant 0 : index
    %c16_75 = arith.constant 16 : index
    %113 = vector.load %arg19[%c0_74, %c16_75] : memref<24x32xbf16, #tpu.memory_space<vmem>>, vector<24x8xbf16>
    %cst_76 = arith.constant dense<0.000000e+00> : vector<8x24xf32>
    %114 = tpu.matmul %112, %113, %cst_76 {dimension_numbers = #tpu.dot_dimension_numbers<[1], [1], [0], [0], [0, 0, 1, 0], [], []>} : vector<8x8xbf16>, vector<24x8xbf16>, vector<8x24xf32> -> vector<8x24xf32>
    %115 = arith.addf %114, %75 : vector<8x24xf32>
    %cst_77 = arith.constant dense<0xFF800000> : vector<8xf32>
    %116 = vector.multi_reduction <maximumf>, %115, %cst_77 [1] : vector<8x24xf32> to vector<8xf32>
    %117 = vector.shape_cast %116 : vector<8xf32> to vector<8x1xf32>
    %118 = vector.broadcast %117 : vector<8x1xf32> to vector<8x24xf32>
    %119 = arith.subf %115, %118 : vector<8x24xf32>
    %120 = math.exp %119 : vector<8x24xf32>
    %cst_78 = arith.constant dense<0.000000e+00> : vector<8xf32>
    %121 = vector.multi_reduction <add>, %120, %cst_78 [1] : vector<8x24xf32> to vector<8xf32>
    %122 = vector.shape_cast %121 : vector<8xf32> to vector<8x1xf32>
    %123 = arith.truncf %120 : vector<8x24xf32> to vector<8x24xbf16>
    %c0_79 = arith.constant 0 : index
    %c16_80 = arith.constant 16 : index
    %124 = vector.load %arg20[%c0_79, %c16_80] : memref<24x32xbf16, #tpu.memory_space<vmem>>, vector<24x8xbf16>
    %cst_81 = arith.constant dense<0.000000e+00> : vector<8x8xf32>
    %125 = tpu.matmul %123, %124, %cst_81 {dimension_numbers = #tpu.dot_dimension_numbers<[1], [0], [0], [1], [0, 0, 1, 1], [], []>} : vector<8x24xbf16>, vector<24x8xbf16>, vector<8x8xf32> -> vector<8x8xf32>
    %126 = tpu.reciprocal %122 {approx = true} : vector<8x1xf32> -> vector<8x1xf32>
    %127 = vector.broadcast %126 : vector<8x1xf32> to vector<8x8xf32>
    %128 = arith.mulf %125, %127 : vector<8x8xf32>
    %c0_82 = arith.constant 0 : index
    %c16_83 = arith.constant 16 : index
    %129 = vector.load %arg21[%c0_82, %c16_83] : memref<8x32xf32, #tpu.memory_space<vmem>>, vector<8x8xf32>
    tpu.vector_store %arg21[%c0_82, %c16_83], %128 {strides = array<i32>} : memref<8x32xf32, #tpu.memory_space<vmem>>, vector<8x8xf32>,
    %130 = vector.extract_strided_slice %60 {offsets = [0, 24], sizes = [8, 8], strides = [1, 1]} : vector<8x32xbf16> to vector<8x8xbf16>
    %c0_84 = arith.constant 0 : index
    %c24 = arith.constant 24 : index
    %131 = vector.load %arg19[%c0_84, %c24] : memref<24x32xbf16, #tpu.memory_space<vmem>>, vector<24x8xbf16>
    %cst_85 = arith.constant dense<0.000000e+00> : vector<8x24xf32>
    %132 = tpu.matmul %130, %131, %cst_85 {dimension_numbers = #tpu.dot_dimension_numbers<[1], [1], [0], [0], [0, 0, 1, 0], [], []>} : vector<8x8xbf16>, vector<24x8xbf16>, vector<8x24xf32> -> vector<8x24xf32>
    %133 = arith.addf %132, %75 : vector<8x24xf32>
    %cst_86 = arith.constant dense<0xFF800000> : vector<8xf32>
    %134 = vector.multi_reduction <maximumf>, %133, %cst_86 [1] : vector<8x24xf32> to vector<8xf32>
    %135 = vector.shape_cast %134 : vector<8xf32> to vector<8x1xf32>
    %136 = vector.broadcast %135 : vector<8x1xf32> to vector<8x24xf32>
    %137 = arith.subf %133, %136 : vector<8x24xf32>
    %138 = math.exp %137 : vector<8x24xf32>
    %cst_87 = arith.constant dense<0.000000e+00> : vector<8xf32>
    %139 = vector.multi_reduction <add>, %138, %cst_87 [1] : vector<8x24xf32> to vector<8xf32>
    %140 = vector.shape_cast %139 : vector<8xf32> to vector<8x1xf32>
    %141 = arith.truncf %138 : vector<8x24xf32> to vector<8x24xbf16>
    %c0_88 = arith.constant 0 : index
    %c24_89 = arith.constant 24 : index
    %142 = vector.load %arg20[%c0_88, %c24_89] : memref<24x32xbf16, #tpu.memory_space<vmem>>, vector<24x8xbf16>
    %cst_90 = arith.constant dense<0.000000e+00> : vector<8x8xf32>
    %143 = tpu.matmul %141, %142, %cst_90 {dimension_numbers = #tpu.dot_dimension_numbers<[1], [0], [0], [1], [0, 0, 1, 1], [], []>} : vector<8x24xbf16>, vector<24x8xbf16>, vector<8x8xf32> -> vector<8x8xf32>
    %144 = tpu.reciprocal %140 {approx = true} : vector<8x1xf32> -> vector<8x1xf32>
    %145 = vector.broadcast %144 : vector<8x1xf32> to vector<8x8xf32>
    %146 = arith.mulf %143, %145 : vector<8x8xf32>
    %c0_91 = arith.constant 0 : index
    %c24_92 = arith.constant 24 : index
    %147 = vector.load %arg21[%c0_91, %c24_92] : memref<8x32xf32, #tpu.memory_space<vmem>>, vector<8x8xf32>
    tpu.vector_store %arg21[%c0_91, %c24_92], %146 {strides = array<i32>} : memref<8x32xf32, #tpu.memory_space<vmem>>, vector<8x8xf32>,
    %c0_93 = arith.constant 0 : index
    %c0_94 = arith.constant 0 : index
    %148 = vector.load %arg21[%c0_93, %c0_94] : memref<8x32xf32, #tpu.memory_space<vmem>>, vector<8x32xf32>
    %149 = arith.truncf %148 : vector<8x32xf32> to vector<8x32xbf16>
    %c0_95 = arith.constant 0 : index
    %c0_96 = arith.constant 0 : index
    %150 = vector.load %arg16[%c0_95, %c0_96] : memref<32x32xbf16, #tpu.memory_space<vmem>>, vector<32x32xbf16>
    %cst_97 = arith.constant dense<0.000000e+00> : vector<8x32xf32>
    %151 = tpu.matmul %149, %150, %cst_97 {dimension_numbers = #tpu.dot_dimension_numbers<[1], [0], [0], [1], [0, 0, 1, 1], [], []>} : vector<8x32xbf16>, vector<32x32xbf16>, vector<8x32xf32> -> vector<8x32xf32>
    %c0_98 = arith.constant 0 : index
    %c0_99 = arith.constant 0 : index
    %152 = vector.load %arg17[%c0_98, %c0_99] : memref<1x32xf32, #tpu.memory_space<vmem>>, vector<1x32xf32>
    %153 = vector.broadcast %152 : vector<1x32xf32> to vector<8x32xf32>
    %154 = arith.addf %151, %153 : vector<8x32xf32>
    %c0_100 = arith.constant 0 : index
    %c0_101 = arith.constant 0 : index
    %c0_102 = arith.constant 0 : index
    %155 = vector.load %arg18[%c0_100, %c0_101, %c0_102] : memref<1x8x32xf32, #tpu.memory_space<vmem>>, vector<1x8x32xf32>
    %156 = vector.shape_cast %155 : vector<1x8x32xf32> to vector<8x32xf32>
    %157 = vector.shape_cast %154 : vector<8x32xf32> to vector<1x8x32xf32>
    tpu.vector_store %arg18[%c0_100, %c0_101, %c0_102], %157 {strides = array<i32>} : memref<1x8x32xf32, #tpu.memory_space<vmem>>, vector<1x8x32xf32>,
    return
  }
  func.func @transform_0(%arg0: i32, %arg1: i32) -> (i32, i32, i32) {
    %c0_i32 = arith.constant 0 : i32
    %c0_i32_0 = arith.constant 0 : i32
    return %arg0, %arg1, %c0_i32 : i32, i32, i32
  }
  func.func @transform_1(%arg0: i32, %arg1: i32) -> (i32, i32, i32) {
    %c1_i32 = arith.constant 1 : i32
    %0 = arith.muli %arg1, %c1_i32 : i32
    %c1_i32_0 = arith.constant 1 : i32
    %1 = arith.subi %0, %c1_i32_0 : i32
    %c0_i32 = arith.constant 0 : i32
    %2 = arith.maxsi %1, %c0_i32 : i32
    %c0_i32_1 = arith.constant 0 : i32
    %c0_i32_2 = arith.constant 0 : i32
    return %arg0, %2, %c0_i32_1 : i32, i32, i32
  }
  func.func @transform_2(%arg0: i32, %arg1: i32) -> (i32, i32, i32) {
    %c0_i32 = arith.constant 0 : i32
    %c0_i32_0 = arith.constant 0 : i32
    return %arg0, %arg1, %c0_i32 : i32, i32, i32
  }
  func.func @transform_3(%arg0: i32, %arg1: i32) -> (i32, i32, i32) {
    %c1_i32 = arith.constant 1 : i32
    %0 = arith.addi %arg1, %c1_i32 : i32
    %c1_i32_0 = arith.constant 1 : i32
    %1 = arith.muli %0, %c1_i32_0 : i32
    %c1_i32_1 = arith.constant 1 : i32
    %2 = arith.minsi %1, %c1_i32_1 : i32
    %c0_i32 = arith.constant 0 : i32
    %c0_i32_2 = arith.constant 0 : i32
    return %arg0, %2, %c0_i32 : i32, i32, i32
  }
  func.func @transform_4(%arg0: i32, %arg1: i32) -> (i32, i32, i32) {
    %c1_i32 = arith.constant 1 : i32
    %0 = arith.muli %arg1, %c1_i32 : i32
    %c1_i32_0 = arith.constant 1 : i32
    %1 = arith.subi %0, %c1_i32_0 : i32
    %c0_i32 = arith.constant 0 : i32
    %2 = arith.maxsi %1, %c0_i32 : i32
    %c0_i32_1 = arith.constant 0 : i32
    %c0_i32_2 = arith.constant 0 : i32
    return %arg0, %2, %c0_i32_1 : i32, i32, i32
  }
  func.func @transform_5(%arg0: i32, %arg1: i32) -> (i32, i32, i32) {
    %c0_i32 = arith.constant 0 : i32
    %c0_i32_0 = arith.constant 0 : i32
    return %arg0, %arg1, %c0_i32 : i32, i32, i32
  }
  func.func @transform_6(%arg0: i32, %arg1: i32) -> (i32, i32, i32) {
    %c1_i32 = arith.constant 1 : i32
    %0 = arith.addi %arg1, %c1_i32 : i32
    %c1_i32_0 = arith.constant 1 : i32
    %1 = arith.muli %0, %c1_i32_0 : i32
    %c1_i32_1 = arith.constant 1 : i32
    %2 = arith.minsi %1, %c1_i32_1 : i32
    %c0_i32 = arith.constant 0 : i32
    %c0_i32_2 = arith.constant 0 : i32
    return %arg0, %2, %c0_i32 : i32, i32, i32
  }
  func.func @transform_7(%arg0: i32, %arg1: i32) -> (i32, i32, i32, i32) {
    %c0_i32 = arith.constant 0 : i32
    %c0_i32_0 = arith.constant 0 : i32
    %c0_i32_1 = arith.constant 0 : i32
    return %arg0, %arg1, %c0_i32, %c0_i32_0 : i32, i32, i32, i32
  }
  func.func @transform_8(%arg0: i32, %arg1: i32) -> (i32, i32) {
    %c0_i32 = arith.constant 0 : i32
    %c0_i32_0 = arith.constant 0 : i32
    %c0_i32_1 = arith.constant 0 : i32
    return %c0_i32, %c0_i32_0 : i32, i32
  }
  func.func @transform_9(%arg0: i32, %arg1: i32) -> (i32, i32) {
    %c0_i32 = arith.constant 0 : i32
    %c0_i32_0 = arith.constant 0 : i32
    %c0_i32_1 = arith.constant 0 : i32
    return %c0_i32, %c0_i32_0 : i32, i32
  }
  func.func @transform_10(%arg0: i32, %arg1: i32) -> (i32, i32) {
    %c0_i32 = arith.constant 0 : i32
    %c0_i32_0 = arith.constant 0 : i32
    %c0_i32_1 = arith.constant 0 : i32
    return %c0_i32, %c0_i32_0 : i32, i32
  }
  func.func @transform_11(%arg0: i32, %arg1: i32) -> (i32, i32) {
    %c0_i32 = arith.constant 0 : i32
    %c0_i32_0 = arith.constant 0 : i32
    %c0_i32_1 = arith.constant 0 : i32
    return %c0_i32, %c0_i32_0 : i32, i32
  }
  func.func @transform_12(%arg0: i32, %arg1: i32) -> (i32, i32) {
    %c0_i32 = arith.constant 0 : i32
    %c0_i32_0 = arith.constant 0 : i32
    %c0_i32_1 = arith.constant 0 : i32
    return %c0_i32, %c0_i32_0 : i32, i32
  }
  func.func @transform_13(%arg0: i32, %arg1: i32) -> (i32, i32) {
    %c0_i32 = arith.constant 0 : i32
    %c0_i32_0 = arith.constant 0 : i32
    %c0_i32_1 = arith.constant 0 : i32
    return %c0_i32, %c0_i32_0 : i32, i32
  }
  func.func @transform_14(%arg0: i32, %arg1: i32) -> (i32, i32) {
    %c0_i32 = arith.constant 0 : i32
    %c0_i32_0 = arith.constant 0 : i32
    %c0_i32_1 = arith.constant 0 : i32
    return %c0_i32, %c0_i32_0 : i32, i32
  }
  func.func @transform_15(%arg0: i32, %arg1: i32) -> (i32, i32) {
    %c0_i32 = arith.constant 0 : i32
    %c0_i32_0 = arith.constant 0 : i32
    %c0_i32_1 = arith.constant 0 : i32
    return %c0_i32, %c0_i32_0 : i32, i32
  }
  func.func @transform_16(%arg0: i32, %arg1: i32) -> (i32, i32, i32) {
    %c0_i32 = arith.constant 0 : i32
    %c0_i32_0 = arith.constant 0 : i32
    return %arg0, %arg1, %c0_i32 : i32, i32, i32
  }
}

</mosaic_0001>

<bundles_post_ra>
// kernel: tpu_custom_call.1
= control target key start
LH: loop header
LB: loop body
LE: loop exit
PB: predicated region body
PF: predicated region fallthrough
CT: control target
= control target key end

     0   :  { %s4128_s0 = inlined_call_operand.hbm [shape: f32[2,16,32], index: 0, kind: input, shape index: {}]   ;;  %s4129_s1 = inlined_call_operand.hbm [shape: f32[2,16,32], index: 1, kind: input, shape index: {}]   ;;  %s4130_s2 = inlined_call_operand.hbm [shape: f32[2,16,32], index: 2, kind: input, shape index: {}]   ;;  %s4131_s3 = inlined_call_operand.hbm [shape: f32[2,16,32], index: 3, kind: input, shape index: {}]   ;;  %s4132_s4 = inlined_call_operand.hbm [shape: f32[2,16,32], index: 4, kind: input, shape index: {}]   ;;  %s4133_s5 = inlined_call_operand.hbm [shape: f32[2,16,32], index: 5, kind: input, shape index: {}]   ;;  %s4134_s6 = inlined_call_operand.hbm [shape: f32[2,16,32], index: 6, kind: input, shape index: {}]   ;;  %s4135_s7 = inlined_call_operand.hbm [shape: f32[2,2,1,24], index: 7, kind: input, shape index: {}]   ;;  %s4136_s8 = inlined_call_operand.hbm [shape: bf16[32,32], index: 8, kind: input, shape index: {}]   ;;  %s4137_s9 = inlined_call_operand.vmem [shape: f32[1,32], index: 9, kind: input, shape index: {}]   ;;  %s4138_s10 = inlined_call_operand.vmem [shape: bf16[32,32], index: 10, kind: input, shape index: {}]   ;;  %s4139_s11 = inlined_call_operand.vmem [shape: f32[1,32], index: 11, kind: input, shape index: {}]   ;;  %s4140_s12 = inlined_call_operand.hbm [shape: bf16[32,32], index: 12, kind: input, shape index: {}]   ;;  %s4141_s13 = inlined_call_operand.vmem [shape: f32[1,32], index: 13, kind: input, shape index: {}]   ;;  %s4142_s14 = inlined_call_operand.hbm [shape: bf16[32,32], index: 14, kind: input, shape index: {}]   ;;  %s4143_s15 = inlined_call_operand.vmem [shape: f32[1,32], index: 15, kind: input, shape index: {}]   ;;  %s4144_s16 = inlined_call_operand.hbm [shape: f32[2,16,32], index: 16, kind: output, shape index: {}]  }
   0x1   :  { %4193 = sst [smem:[#allocation59_spill]] %s4128_s0 }
   0x2   :  { %4194 = sst [smem:[#allocation60_spill]] %s4129_s1 }
   0x3   :  { %4195 = sst [smem:[#allocation61_spill]] %s4130_s2 }
   0x4   :  { %4196 = sst [smem:[#allocation62_spill]] %s4131_s3 }
   0x5   :  { %4197 = sst [smem:[#allocation63_spill]] %s4132_s4 }
   0x6   :  { %4198 = sst [smem:[#allocation64_spill]] %s4133_s5 }
   0x7   :  { %4199 = sst [smem:[#allocation65_spill]] %s4135_s7 }
   0x8   :  { %4200 = sst [smem:[#allocation66_spill]] %s4136_s8 }
   0x9   :  { %4201 = sst [smem:[#allocation67_spill]] %s4137_s9 }
   0xa   :  { %4202 = sst [smem:[#allocation68_spill]] %s4138_s10 }
   0xb   :  { %4203 = sst [smem:[#allocation69_spill]] %s4139_s11 }
   0xc   :  { %4204 = sst [smem:[#allocation70_spill]] %s4140_s12 }
   0xd   :  { %4205 = sst [smem:[#allocation71_spill]] %s4141_s13 }
   0xe   :  { %4206 = sst [smem:[#allocation72_spill]] %s4142_s14 }
   0xf   :  { %4207 = sst [smem:[#allocation73_spill]] %s4143_s15 }
  0x10   :  { %4208 = sst [smem:[#allocation74_spill]] %s4144_s16 }
  0x11   :  { %21 = vsyncpa [#allocation6], 0 }
  0x12   :  { %23 = vsyncpa [#allocation6 + $0x1], 0 }
  0x13   :  { %24 = vsyncpa [#allocation9], 0 }
  0x14   :  { %26 = vsyncpa [#allocation9 + $0x1], 0 }
  0x15   :  { %27 = vsyncpa [#allocation12], 0 }
  0x16   :  { %29 = vsyncpa [#allocation12 + $0x1], 0 }
  0x17   :  { %30 = vsyncpa [#allocation15], 0 }
  0x18   :  { %32 = vsyncpa [#allocation15 + $0x1], 0 }
  0x19   :  { %33 = vsyncpa [#allocation18], 0 }
  0x1a   :  { %35 = vsyncpa [#allocation18 + $0x1], 0 }
  0x1b   :  { %36 = vsyncpa [#allocation21], 0 }
  0x1c   :  { %37 = vsyncpa [#allocation7], 0 }
  0x1d   :  { %39 = vsyncpa [#allocation7 + $0x1], 0  ;;  %s3389_s21 = smov 0   ;;  %s3391_s22 = smov 0  }
  0x1e   :  { %s3393_s23 = smov 0   ;;  %s3395_s24 = smov 0  }
  0x1f   :  { %s3397_s25 = smov 0   ;;  %s3399_s26 = smov 0  }
  0x20   :  { %s3401_s27 = smov 0   ;;  %s3403_s28 = smov 0  }
  0x21   :  { %s3405_s29 = smov 0   ;;  %s3407_s30 = smov 0  }
  0x22   :  { %s3409_s0 = smov 0   ;;  %s3411_s17 = smov 0  }
  0x23   :  { %s3413_s18 = smov 0   ;;  %s3415_s19 = smov 0  }
  0x24 LB: > { %4209 = sst [smem:[#allocation35_spill]] %s3231_s22  ;;  %s3460_s20 = sadd.s32 4294967295, %s3279_s19   ;;  %s3279_s19 = sphi %s3415_s19, %s45_s19   ;;  %s3275_s18 = sphi %s3413_s18, %s4325_s18   ;;  %s3271_s17 = sphi %s3411_s17, %s4324_s17   ;;  %s3267_s0 = sphi %s3409_s0, %s4323_s0   ;;  %s3263_s30 = sphi %s3407_s30, %s4322_s30   ;;  %s3259_s29 = sphi %s3405_s29, %s4321_s29   ;;  %s3255_s28 = sphi %s3403_s28, %s4320_s28   ;;  %s3251_s27 = sphi %s3401_s27, %s4319_s27   ;;  %s3247_s26 = sphi %s3399_s26, %s4318_s26   ;;  %s3243_s25 = sphi %s3397_s25, %s4317_s25   ;;  %s3239_s24 = sphi %s3395_s24, %s4316_s24   ;;  %s3235_s23 = sphi %s3393_s23, %s4315_s23   ;;  %s3231_s22 = sphi %s3391_s22, %s4314_s22   ;;  %s3227_s21 = sphi %s3389_s21, %s4313_s21  }
  0x25   : > { %4210 = sst [smem:[#allocation36_spill]] %s3235_s23  ;;  %p2280_p0 = scmp.ge.s32.totalorder %s3279_s19, 1 }
  0x26   : > { %4211 = sst [smem:[#allocation37_spill]] %s3243_s25  ;;  %p4160_p1 = scmp.eq.s32.totalorder %s3460_s20, 0 }
  0x27   : > { %4212 = sst [smem:[#allocation38_spill]] %s3247_s26  ;;  %p506_p2 = scmp.lt.s32.totalorder %s3279_s19, 5 }
  0x28   : > { %4213 = sst [smem:[#allocation39_spill]] %s3251_s27  ;;  %s3281_s15 = smov [#allocation19]  }
  0x29   : > { %4214 = sst [smem:[#allocation40_spill]] %s3255_s28  ;;  %p3465_p3 = pnand %p2280_p0, %p506_p2 }
  0x2a   : > { %4215 = sst [smem:[#allocation41_spill]] %s3259_s29  ;;  %s3282_s13 = smov [#allocation20]  }
  0x2b   : > { %4216 = sst [smem:[#allocation42_spill]] %s3263_s30  ;;  %s518_s30 = sshll.u32 %s3281_s15, 4  ;;  %s519_s30 = int_to_ptr.vmem [resolvable:$true] %s518_s30 }
  0x2c   : > { %4217 = sst [smem:[#allocation43_spill]] %s3267_s0  ;;  %p2580_p4 = pneg %p3465_p3 }
  0x2d   : > { %4218 = sst [smem:[#allocation44_spill]] %s3271_s17  ;;  %s540_s11 = sshll.u32 %s3282_s13, 4  ;;  %s541_s11 = int_to_ptr.vmem [resolvable:$true] %s540_s11 }
  0x2e   : > { %4219 = sst [smem:[#allocation45_spill]] %s3275_s18  ;;  %p3473_p5 = pnand %p2580_p4, %p4160_p1 }
  0x2f   : > { %4220 = sst [smem:[#allocation46_spill]] %s3279_s19  ;;  %s2804_s9 = scalar_lea.vmem %s519_s30, 256 }
  0x30   : > { %4221 = sst [smem:[#allocation47_spill]] %s3460_s20  ;;  %p4157_p6 = pneg %p3473_p5 }
  0x31   : > { %s4222_s16 = scalar_select %p3465_p3, 1, 0 }
  0x32   : > { %p2805_p7 = scmp.ne.s32.totalorder %s519_s30, %s2804_s9  ;;  %p2812_p10 = scmp.lt.s32.totalorder %s519_s30, %s519_s30 }
  0x33   : > { %4223 = sst [smem:[#allocation48_spill]] %s4222_s16  ;;  %p2813_p11 = scmp.lt.s32.totalorder %s2804_s9, %s2804_s9 }
  0x34   : > { %p2807_p8 = pnand %p2805_p7, %p4157_p6 }
  0x35   : > { %p2814_p12 = por %p2813_p11, %p2812_p10 }
  0x36   : > { %p2808_p9 = pneg %p2807_p8 }
  0x38   : > { %p2815_p13 = pnand %p2814_p12, %p2808_p9 }
  0x3a   : > { %2818 = shalt.err (!%p2815_p13)
}
  0x3b   : > { %s4149_s15 = smov 64   ;;  %s4150_s10 = smov 4  }
  0x3c   : > { %s4225_s8 = sld [smem:[#allocation66_spill]]  ;;  %s2830_s7 = scalar_lea.vmem %s541_s11, 256 }
  0x3d   : > { %p2831_p0 = scmp.ne.s32.totalorder %s541_s11, %s2830_s7  ;;  %p2838_p7 = scmp.lt.s32.totalorder %s541_s11, %s541_s11 }
  0x3e   : > { %p2839_p8 = scmp.lt.s32.totalorder %s2830_s7, %s2830_s7 }
  0x3f   : > { %p2833_p2 = pnand %p2831_p0, %p4157_p6 }
  0x40   : > { %p2840_p9 = por %p2839_p8, %p2838_p7 }
  0x41   : > { %p2834_p4 = pneg %p2833_p2 }
  0x42   : > { %2583 = dma.hbm_to_vmem [thread:$0]  (!%p3473_p5), %s4225_s8, 256, %s519_s30, [#allocation18], %s4149_s15, %s4149_s15, %s4150_s10  }
  0x43   : > { %p2841_p10 = pnand %p2840_p9, %p2834_p4 }
  0x45   : > { %2844 = shalt.err (!%p2841_p10)
}
  0x46   : > { %s4226_s12 = sld [smem:[#allocation70_spill]]  ;;  %s54_s7 = sadd.s32 1, %s3271_s17 }
  0x47   : > { %s57_s16 = sadd.s32 1, %s3275_s18  ;;  %p55_p11 = scmp.ge.s32.totalorder %s54_s7, 2 }
  0x48   : > { %p4161_p12 = scmp.eq.s32.totalorder %s3279_s19, 0  ;;  %s100_s2 = sadd.s32 1, %s3247_s26 }
  0x49   : > { %s4327_s7 = smov (%p55_p11, %s54_s7), 0  ;;  %s4329_s16 = smov (!%p55_p11, %s57_s16), %s3275_s18 }
  0x4a   : > { %4227 = sst [smem:[#allocation49_spill]] %s4327_s7  ;;  %s62_s30 = ssub.s32 %s3271_s17, %s4327_s7 }
  0x4b   : > { %p59_p13 = scmp.ge.s32.totalorder %s4329_s16, 2  ;;  %p107_p0 = scmp.ne.s32.totalorder %s3247_s26, %s3243_s25 }
  0x4c   : > { %2586 = dma.hbm_to_vmem [thread:$0]  (!%p3473_p5), %s4226_s12, 256, %s541_s11, [#allocation21], %s4149_s15, %s4149_s15, %s4150_s10  }
  0x4d   : > { %s4331_s16 = smov (%p59_p13, %s4329_s16), 0  ;;  %p113_p2 = scmp.ne.s32.totalorder %s3243_s25, %s3239_s24 }
  0x4e   : > { %4228 = sst [smem:[#allocation50_spill]] %s4331_s16  ;;  %s3516_s11 = ssub.s32 %s3275_s18, %s4331_s16 }
  0x4f   : > { %s3521_s13 = sor.u32 %s62_s30, %s3516_s11  ;;  %p3525_p4 = por %p107_p0, %p4161_p12 }
  0x50   : > { %p3532_p8 = por %p113_p2, %p4160_p1  ;;  %p4158_p9 = scmp.lt.s32.totalorder %s3279_s19, 4 }
  0x51   : > { %s3539_s8 = sand.u32 1, %s3279_s19   ;;  %p4159_p10 = scmp.eq.s32.totalorder %s3516_s11, 0 }
  0x52   : > { %s4230_s15 = scalar_select %p3532_p8, 1, 0 }
  0x53   : > { %s595_s24 = sand.u32 1, %s3247_s26   ;;  %s3551_s16 = sshll.u32 %s3275_s18, 8 }
  0x54   : > { %4231 = sst [smem:[#allocation51_spill]] %s4230_s15  ;;  %s3543_s30 = sshll.u32 %s595_s24, 3 }
  0x55   : > { %s3548_s12 = scalar_select %p4159_p10, %s3247_s26, %s100_s2  }
  0x56   : > { %s4233_s1 = sld [smem:[#allocation60_spill]]  ;;  %s597_s10 = scalar_lea.vmem [#allocation8], %s3543_s30 }
  0x57   : > { %4232 = sst [smem:[#allocation52_spill]] %s3548_s12  ;;  %s609_s14 = sshll.u32 %s597_s10, 4  ;;  %s610_s14 = int_to_ptr.vmem [resolvable:$true] %s609_s14 }
  0x58   : > { %p3564_p11 = pnand %p4158_p9, %p3525_p4  ;;  %s4235_s4 = sld [smem:[#allocation63_spill]] }
  0x5a   : > { %s4234_s2 = scalar_select %p3564_p11, 1, 0 }
  0x5b   : > { %p4166_p0 = pneg %p3564_p11 }
  0x5c   : > { %s3557_s15 = scalar_lea.hbm %s4233_s1, %s3551_s16 }
  0x5d   : > { %s2845_s26 = scalar_lea.hbm %s3557_s15, 128  ;;  %p2851_p4 = scmp.lt.s32.totalorder %s3557_s15, %s4233_s1 }
  0x5e   : > { %s3572_s25 = scalar_lea.hbm %s4235_s4, %s3551_s16  ;;  %p2846_p13 = scmp.ne.s32.totalorder %s3557_s15, %s2845_s26 }
  0x60   : > { %p2848_p2 = pnand %p4166_p0, %p2846_p13 }
  0x62   : > { %p2849_p6 = pneg %p2848_p2 }
  0x64   : > { %p2854_p7 = pnand %p2851_p4, %p2849_p6 }
  0x66   : > { %2857 = shalt.err (!%p2854_p7)
}
  0x67   : > { %s2858_s12 = scalar_lea.vmem %s610_s14, 128  ;;  %s3285_s26 = smov [#allocation8]  }
  0x68   : > { %p2859_p9 = scmp.ne.s32.totalorder %s610_s14, %s2858_s12  ;;  %s2863_s24 = sshll.u32 %s3285_s26, 4  ;;  %s2864_s24 = int_to_ptr.vmem [resolvable:$false] %s2863_s24 }
  0x69   : > { %s2865_s7 = scalar_lea.vmem %s2864_s24, 256  ;;  %p2866_p12 = scmp.lt.s32.totalorder %s610_s14, %s2864_s24 }
  0x6a   : > { %p2861_p10 = pnand %p2859_p9, %p4166_p0  ;;  %p2867_p13 = scmp.lt.s32.totalorder %s2865_s7, %s2858_s12 }
  0x6c   : > { %p2862_p1 = pneg %p2861_p10  ;;  %p2868_p2 = por %p2867_p13, %p2866_p12 }
  0x6e   : > { %p2869_p8 = pnand %p2868_p2, %p2862_p1 }
  0x70   : > { %2872 = shalt.err (!%p2869_p8)
}
  0x71   : > { %s4236_s10 = scalar_lea.sflag [#allocation9], %s3539_s8  ;;  %s162_s7 = sadd.s32 1, %s3235_s23 }
  0x72   : > { %2596 = dma.hbm_to_vmem [thread:$0]  (!%p3564_p11), %s3557_s15, 128, %s610_s14, %s4236_s10  }
  0x73   : > { %p169_p1 = scmp.ne.s32.totalorder %s3235_s23, %s3231_s22  ;;  %p175_p6 = scmp.ne.s32.totalorder %s3231_s22, %s3227_s21 }
  0x74   : > { %p4237_p12 = scmp.eq.s32.totalorder %s3279_s19, 0  ;;  %p4238_p8 = scmp.eq.s32.totalorder %s3460_s20, 0 }
  0x75   : > { %s638_s12 = sand.u32 1, %s3235_s23   ;;  %p4241_p10 = scmp.eq.s32.totalorder %s3516_s11, 0 }
  0x76   : > { %p171_p7 = por %p169_p1, %p4237_p12  ;;  %p3603_p9 = por %p175_p6, %p4238_p8 }
  0x77   : > { %s3608_s26 = sshll.u32 %s638_s12, 3  ;;  %s3223_s14 = sadd.s32 128, %s3551_s16 }
  0x78   : > { %s4239_s9 = scalar_select %p3603_p9, 1, 0 }
  0x79   : > { %s640_s24 = scalar_lea.vmem [#allocation11], %s3608_s26  ;;  %s4243_s3 = sld [smem:[#allocation62_spill]] }
  0x7a   : > { %4240 = sst [smem:[#allocation53_spill]] %s4239_s9  ;;  %s652_s1 = sshll.u32 %s640_s24, 4  ;;  %s653_s1 = int_to_ptr.vmem [resolvable:$true] %s652_s1 }
  0x7b   : > { %s3614_s4 = scalar_select %p4241_p10, %s3235_s23, %s162_s7  }
  0x7c   : > { %p4244_p4 = scmp.lt.s32.totalorder %s3279_s19, 4  ;;  %s3629_s24 = scalar_lea.hbm %s4134_s6, %s3223_s14 }
  0x7d   : > { %4242 = sst [smem:[#allocation54_spill]] %s3614_s4 }
  0x7e   : > { %p3622_p13 = pnand %p4244_p4, %p171_p7 }
  0x7f   : > { %s650_s10 = scalar_lea.hbm %s4243_s3, %s3223_s14  ;;  %s2878_s21 = scalar_lea.hbm %s4243_s3, 512 }
  0x80   : > { %s4245_s22 = scalar_select %p3622_p13, 1, 0 }
  0x81   : > { %s2873_s7 = scalar_lea.hbm %s650_s10, 128  ;;  %p4175_p1 = pneg %p3622_p13 }
  0x82   : > { %p2874_p2 = scmp.ne.s32.totalorder %s650_s10, %s2873_s7  ;;  %p2880_p7 = scmp.lt.s32.totalorder %s2878_s21, %s2873_s7 }
  0x84   : > { %p2876_p6 = pnand %p4175_p1, %p2874_p2 }
  0x86   : > { %p2877_p12 = pneg %p2876_p6 }
  0x88   : > { %p2882_p8 = pnand %p2880_p7, %p2877_p12 }
  0x8a   : > { %2885 = shalt.err (!%p2882_p8)
}
  0x8b   : > { %s2886_s9 = scalar_lea.vmem %s653_s1, 128  ;;  %s3286_s14 = smov [#allocation11]  }
  0x8c   : > { %p2887_p10 = scmp.ne.s32.totalorder %s653_s1, %s2886_s9  ;;  %s2891_s12 = sshll.u32 %s3286_s14, 4  ;;  %s2892_s12 = int_to_ptr.vmem [resolvable:$false] %s2891_s12 }
  0x8d   : > { %s2893_s11 = scalar_lea.vmem %s2892_s12, 256  ;;  %p2894_p2 = scmp.lt.s32.totalorder %s653_s1, %s2892_s12 }
  0x8e   : > { %p2889_p4 = pnand %p2887_p10, %p4175_p1  ;;  %p2895_p6 = scmp.lt.s32.totalorder %s2893_s11, %s2886_s9 }
  0x90   : > { %p2890_p0 = pneg %p2889_p4  ;;  %p2896_p9 = por %p2895_p6, %p2894_p2 }
  0x92   : > { %p2897_p3 = pnand %p2896_p9, %p2890_p0 }
  0x94   : > { %2900 = shalt.err (!%p2897_p3)
}
  0x95   : > { %s4246_s7 = scalar_lea.sflag [#allocation12], %s3539_s8  ;;  %s2275_s11 = sadd.s32 4294967294, %s3279_s19  }
  0x96   : > { %2602 = dma.hbm_to_vmem [thread:$0]  (!%p3622_p13), %s650_s10, 128, %s653_s1, %s4246_s7  }
  0x97   : > { %s66_s16 = sadd.s32 1, %s3259_s29  ;;  %p73_p3 = scmp.ne.s32.totalorder %s3259_s29, %s3255_s28 }
  0x98   : > { %p4247_p0 = scmp.eq.s32.totalorder %s3521_s13, 0  ;;  %p4249_p9 = scmp.eq.s32.totalorder %s3279_s19, 0 }
  0x99   : > { %p79_p7 = scmp.ne.s32.totalorder %s3255_s28, %s3251_s27  ;;  %p493_p8 = scmp.eq.s32.totalorder %s3460_s20, 3 }
  0x9a   : > { %s3654_s15 = scalar_select %p4247_p0, %s3259_s29, %s66_s16  }
  0x9b   : > { %p75_p12 = por %p4249_p9, %p73_p3  ;;  %p499_p10 = scmp.eq.s32.totalorder %s2275_s11, 3 }
  0x9c   : > { %4248 = sst [smem:[#allocation55_spill]] %s3654_s15  ;;  %p4250_p4 = scmp.eq.s32.totalorder %s3460_s20, 0 }
  0x9d   : > { %s3668_s9 = sand.u32 1, %s3259_s29   ;;  %p3670_p6 = por %p493_p8, %p73_p3 }
  0x9e   : > { %p3663_p2 = por %p4250_p4, %p79_p7  ;;  %p3674_p0 = por %p499_p10, %p79_p7 }
  0x9f   : > { %s4253_s1 = scalar_select %p3670_p6, 1, 0 }
  0xa0   : > { %s4251_s21 = scalar_select %p3663_p2, 1, 0 }
  0xa1   : > { %4254 = sst [smem:[#allocation57_spill]] %s4253_s1  ;;  %s3679_s10 = sshll.u32 %s3668_s9, 3 }
  0xa2   : > { %4252 = sst [smem:[#allocation56_spill]] %s4251_s21  ;;  %s4257_s14 = sshll.u32 %s3275_s18, 1 }
  0xa3   : > { %s4255_s13 = scalar_select %p3674_p0, 1, 0 }
  0xa4   : > { %s3684_s12 = sadd.s32 %s3271_s17, %s4257_s14  ;;  %p4258_p9 = scmp.lt.s32.totalorder %s3279_s19, 4 }
  0xa5   : > { %4256 = sst [smem:[#allocation58_spill]] %s4255_s13  ;;  %s3687_s7 = sshll.u32 %s3684_s12, 7 }
  0xa6   : > { %p3691_p4 = pnand %p4258_p9, %p75_p12  ;;  %s4260_s5 = sld [smem:[#allocation64_spill]] }
  0xa7   : > { %s686_s29 = scalar_lea.vmem [#allocation14], %s3679_s10  ;;  %s3287_s14 = smov [#allocation22]  }
  0xa8   : > { %s695_s18 = sshll.u32 %s686_s29, 4  ;;  %s556_s17 = sshll.u32 %s3287_s14, 4  ;;  %s696_s18 = int_to_ptr.vmem [resolvable:$true] %s695_s18  ;;  %s557_s17 = int_to_ptr.vmem [resolvable:$true] %s556_s17 }
  0xa9   : > { %s4183_s4 = scalar_lea.sflag [#allocation15], %s3539_s8  ;;  %p4177_p3 = pneg %p3691_p4 }
  0xaa   : > { %s2914_s23 = scalar_lea.vmem %s696_s18, 128  ;;  %s3288_s13 = smov [#allocation14]  }
  0xab   : > { %p2915_p7 = scmp.ne.s32.totalorder %s696_s18, %s2914_s23  ;;  %s2919_s27 = sshll.u32 %s3288_s13, 4  ;;  %s2920_s27 = int_to_ptr.vmem [resolvable:$false] %s2919_s27 }
  0xac   : > { %s693_s15 = scalar_lea.hbm %s4260_s5, %s3687_s7  ;;  %s2921_s3 = scalar_lea.vmem %s2920_s27, 256 }
  0xad   : > { %p2917_p12 = pnand %p2915_p7, %p4177_p3  ;;  %p2922_p10 = scmp.lt.s32.totalorder %s696_s18, %s2920_s27 }
  0xae   : > { %p2923_p9 = scmp.lt.s32.totalorder %s2921_s3, %s2914_s23 }
  0xaf   : > { %p2918_p8 = pneg %p2917_p12 }
  0xb0   : > { %p2924_p1 = por %p2923_p9, %p2922_p10 }
  0xb2   : > { %p2925_p0 = pnand %p2924_p1, %p2918_p8 }
  0xb4   : > { %2928 = shalt.err (!%p2925_p0)
}
  0xb5   : > { %2608 = dma.hbm_to_vmem [thread:$0]  (!%p3691_p4), %s693_s15, 128, %s696_s18, %s4183_s4  }
  0xb6   : > { %s2940_s29 = scalar_lea.vmem %s557_s17, 256  ;;  %p4261_p7 = pneg %p3473_p5 }
  0xb7   : > { %p2941_p6 = scmp.ne.s32.totalorder %s557_s17, %s2940_s29  ;;  %p2948_p2 = scmp.lt.s32.totalorder %s557_s17, %s557_s17 }
  0xb8   : > { %p2949_p13 = scmp.lt.s32.totalorder %s2940_s29, %s2940_s29 }
  0xb9   : > { %p2943_p12 = pnand %p2941_p6, %p4261_p7 }
  0xba   : > { %p2950_p11 = por %p2949_p13, %p2948_p2 }
  0xbb   : > { %p2944_p3 = pneg %p2943_p12 }
  0xbd   : > { %p2951_p9 = pnand %p2950_p11, %p2944_p3 }
  0xbf   : > { %2954 = shalt.err (!%p2951_p9)
}
  0xc0   : > { %s4262_s23 = smov 4   ;;  %s4263_s27 = smov 64  }
  0xc1   : > { %s4264_s18 = sld [smem:[#allocation72_spill]]  ;;  %s577_s4 = scalar_lea.vmem [#allocation5], %s3679_s10 }
  0xc2   : > { %s4265_s3 = sld [smem:[#allocation59_spill]]  ;;  %s586_s5 = sshll.u32 %s577_s4, 4  ;;  %s587_s5 = int_to_ptr.vmem [resolvable:$true] %s586_s5 }
  0xc3   : > { %s4266_s1 = sld [smem:[#allocation61_spill]]  ;;  %s574_s21 = scalar_lea.sflag [#allocation6], %s3668_s9 }
  0xc4   : > { %s2968_s28 = scalar_lea.vmem %s587_s5, 128  ;;  %p4267_p13 = pneg %p3691_p4 }
  0xc5   : > { %p2969_p11 = scmp.ne.s32.totalorder %s587_s5, %s2968_s28  ;;  %s3289_s13 = smov [#allocation5]  }
  0xc7   : > { %2589 = dma.hbm_to_vmem [thread:$0]  (!%p3473_p5), %s4264_s18, 256, %s557_s17, [#allocation21], %s4263_s27, %s4263_s27, %s4262_s23  }
  0xc8   : > { %s584_s29 = scalar_lea.hbm %s4265_s3, %s3687_s7  ;;  %p2971_p1 = pnand %p2969_p11, %p4267_p13 }
  0xc9   : > { %s627_s20 = scalar_lea.hbm %s4266_s1, %s3687_s7  ;;  %s2973_s17 = sshll.u32 %s3289_s13, 4  ;;  %s2974_s17 = int_to_ptr.vmem [resolvable:$false] %s2973_s17 }
  0xca   : > { %p2972_p2 = pneg %p2971_p1  ;;  %s2975_s23 = scalar_lea.vmem %s2974_s17, 256 }
  0xcb   : > { %p2976_p5 = scmp.lt.s32.totalorder %s587_s5, %s2974_s17  ;;  %p2977_p6 = scmp.lt.s32.totalorder %s2975_s23, %s2968_s28 }
  0xcd   : > { %p2978_p0 = por %p2977_p6, %p2976_p5 }
  0xcf   : > { %p2979_p3 = pnand %p2978_p0, %p2972_p2 }
  0xd1   : > { %2982 = shalt.err (!%p2979_p3)
}
  0xd2   : > { %2593 = dma.hbm_to_vmem [thread:$0]  (!%p3691_p4), %s584_s29, 128, %s587_s5, %s574_s21  }
  0xd3   : > { %s620_s4 = scalar_lea.vmem [#allocation10], %s3679_s10  ;;  %s663_s27 = scalar_lea.vmem [#allocation13], %s3543_s30 }
  0xd4   : > { %s629_s19 = sshll.u32 %s620_s4, 4  ;;  %s675_s16 = sshll.u32 %s663_s27, 4  ;;  %s630_s19 = int_to_ptr.vmem [resolvable:$true] %s629_s19  ;;  %s3738_s16 = int_to_ptr.vmem [resolvable:$true] %s675_s16 }
  0xd5   : > { %s2996_s18 = scalar_lea.vmem %s630_s19, 128  ;;  %p4268_p10 = pmov %p4267_p13 }
  0xd6   : > { %p2997_p8 = scmp.ne.s32.totalorder %s630_s19, %s2996_s18  ;;  %s3290_s28 = smov [#allocation10]  }
  0xd7   : > { %s3001_s15 = sshll.u32 %s3290_s28, 4  ;;  %s3002_s15 = int_to_ptr.vmem [resolvable:$false] %s3001_s15 }
  0xd8   : > { %p2999_p7 = pnand %p2997_p8, %p4268_p10  ;;  %s3003_s14 = scalar_lea.vmem %s3002_s15, 256 }
  0xd9   : > { %p3004_p9 = scmp.lt.s32.totalorder %s630_s19, %s3002_s15  ;;  %p3005_p11 = scmp.lt.s32.totalorder %s3003_s14, %s2996_s18 }
  0xda   : > { %p3000_p12 = pneg %p2999_p7 }
  0xdb   : > { %p3006_p13 = por %p3005_p11, %p3004_p9 }
  0xdd   : > { %p3007_p1 = pnand %p3006_p13, %p3000_p12 }
  0xdf   : > { %3010 = shalt.err (!%p3007_p1)
}
  0xe0   : > { %s4269_s5 = scalar_lea.sflag [#allocation9], %s3539_s8  ;;  %s3011_s10 = scalar_lea.hbm %s3572_s25, 128 }
  0xe1   : > { %2599 = dma.hbm_to_vmem [thread:$0]  (!%p3691_p4), %s627_s20, 128, %s630_s19, %s4269_s5  }
  0xe2   : > { %p3012_p2 = scmp.ne.s32.totalorder %s3572_s25, %s3011_s10  ;;  %p4270_p5 = scmp.ne.s32.totalorder %s4234_s2, 0 }
  0xe3   : > { %s4272_s0 = sld [smem:[#allocation63_spill]] }
  0xe4   : > { %p4271_p6 = pneg %p4270_p5 }
  0xe6   : > { %p3014_p0 = pnand %p3012_p2, %p4271_p6 }
  0xe8   : > { %p3015_p3 = pneg %p3014_p0 }
  0xe9   : > { %p3017_p8 = scmp.lt.s32.totalorder %s3572_s25, %s4272_s0 }
  0xeb   : > { %p3020_p10 = pnand %p3017_p8, %p3015_p3 }
  0xed   : > { %3023 = shalt.err (!%p3020_p10)
}
  0xee   : > { %s3024_s7 = scalar_lea.vmem %s3738_s16, 128  ;;  %p4273_p12 = pmov %p4271_p6 }
  0xef   : > { %p3025_p7 = scmp.ne.s32.totalorder %s3738_s16, %s3024_s7  ;;  %s3291_s20 = smov [#allocation13]  }
  0xf0   : > { %s3029_s13 = sshll.u32 %s3291_s20, 4  ;;  %s3030_s13 = int_to_ptr.vmem [resolvable:$false] %s3029_s13 }
  0xf1   : > { %p3027_p9 = pnand %p3025_p7, %p4273_p12  ;;  %s3031_s17 = scalar_lea.vmem %s3030_s13, 256 }
  0xf2   : > { %p3032_p13 = scmp.lt.s32.totalorder %s3738_s16, %s3030_s13  ;;  %p3033_p1 = scmp.lt.s32.totalorder %s3031_s17, %s3024_s7 }
  0xf3   : > { %p3028_p11 = pneg %p3027_p9 }
  0xf4   : > { %p3034_p2 = por %p3033_p1, %p3032_p13 }
  0xf6   : > { %p3035_p6 = pnand %p3034_p2, %p3028_p11 }
  0xf8   : > { %3038 = shalt.err (!%p3035_p6)
}
  0xf9   : > { %s4274_s23 = scalar_lea.sflag [#allocation12], %s3539_s8  ;;  %s706_s4 = scalar_lea.vmem [#allocation16], %s3608_s26 }
  0xfa   : > { %2605 = dma.hbm_to_vmem [thread:$0]  (!%p4270_p5), %s3572_s25, 128, %s3738_s16, %s4274_s23  }
  0xfb   : > { %s718_s19 = sshll.u32 %s706_s4, 4  ;;  %s3039_s27 = scalar_lea.hbm %s3629_s24, 128  ;;  %s719_s19 = int_to_ptr.vmem [resolvable:$true] %s718_s19 }
  0xfc   : > { %p3040_p0 = scmp.ne.s32.totalorder %s3629_s24, %s3039_s27  ;;  %p4275_p3 = scmp.ne.s32.totalorder %s4245_s22, 0 }
  0xfd   : > { %s3044_s28 = scalar_lea.hbm %s4134_s6, 512 }
  0xfe   : > { %p4276_p8 = pneg %p4275_p3  ;;  %p3046_p12 = scmp.lt.s32.totalorder %s3044_s28, %s3039_s27 }
 0x100   : > { %p3042_p10 = pnand %p3040_p0, %p4276_p8 }
 0x102   : > { %p3043_p7 = pneg %p3042_p10 }
 0x104   : > { %p3048_p9 = pnand %p3046_p12, %p3043_p7 }
 0x106   : > { %3051 = shalt.err (!%p3048_p9)
}
 0x107   : > { %s3052_s15 = scalar_lea.vmem %s719_s19, 128  ;;  %p4277_p5 = pmov %p4276_p8 }
 0x108   : > { %p3053_p11 = scmp.ne.s32.totalorder %s719_s19, %s3052_s15  ;;  %s3292_s25 = smov [#allocation16]  }
 0x109   : > { %s3057_s26 = sshll.u32 %s3292_s25, 4  ;;  %s3058_s26 = int_to_ptr.vmem [resolvable:$false] %s3057_s26 }
 0x10a   : > { %p3055_p13 = pnand %p3053_p11, %p4277_p5  ;;  %s3059_s16 = scalar_lea.vmem %s3058_s26, 256 }
 0x10b   : > { %p3060_p2 = scmp.lt.s32.totalorder %s719_s19, %s3058_s26  ;;  %p3061_p6 = scmp.lt.s32.totalorder %s3059_s16, %s3052_s15 }
 0x10c   : > { %p3056_p1 = pneg %p3055_p13 }
 0x10d   : > { %p3062_p0 = por %p3061_p6, %p3060_p2 }
 0x10f   : > { %p3063_p8 = pnand %p3062_p0, %p3056_p1 }
 0x111   : > { %3066 = shalt.err (!%p3063_p8)
}
 0x112   : > { %s4278_s14 = scalar_lea.sflag [#allocation15], %s3539_s8  ;;  %s2309_s5 = sshll.u32 %s3684_s12, 4 }
 0x113   : > { %2611 = dma.hbm_to_vmem [thread:$0]  (!%p4275_p3), %s3629_s24, 128, %s719_s19, %s4278_s14  }
 0x114   : > { %s728_s30 = scalar_lea.vmem [#allocation17], %s3668_s9  ;;  %s4279_s29 = sld [smem:[#allocation65_spill]] }
 0x115   : > { %s737_s21 = sshll.u32 %s728_s30, 4  ;;  %s726_s7 = scalar_lea.sflag [#allocation18], %s3539_s8  ;;  %s738_s21 = int_to_ptr.vmem [resolvable:$true] %s737_s21 }
 0x116   : > { %s3080_s20 = scalar_lea.vmem %s738_s21, 16  ;;  %p4280_p7 = pneg %p3691_p4 }
 0x117   : > { %p3081_p10 = scmp.ne.s32.totalorder %s738_s21, %s3080_s20  ;;  %s3293_s22 = smov [#allocation17]  }
 0x118   : > { %s3085_s13 = sshll.u32 %s3293_s22, 4  ;;  %s3086_s13 = int_to_ptr.vmem [resolvable:$false] %s3085_s13 }
 0x119   : > { %p3083_p12 = pnand %p3081_p10, %p4280_p7  ;;  %s3087_s17 = scalar_lea.vmem %s3086_s13, 32 }
 0x11a   : > { %s735_s0 = scalar_lea.hbm %s4279_s29, %s2309_s5  ;;  %p3088_p3 = scmp.lt.s32.totalorder %s738_s21, %s3086_s13 }
 0x11b   : > { %p3084_p9 = pneg %p3083_p12  ;;  %p3089_p11 = scmp.lt.s32.totalorder %s3087_s17, %s3080_s20 }
 0x11d   : > { %p3090_p5 = por %p3089_p11, %p3088_p3 }
 0x11f   : > { %p3091_p13 = pnand %p3090_p5, %p3084_p9 }
 0x121   : > { %3094 = shalt.err (!%p3091_p13)
}
 0x122   : > { %2614 = dma.hbm_to_vmem [thread:$0]  (!%p3691_p4), %s735_s0, 16, %s738_s21, %s726_s7  }
 0x123   : > { %s4281_s24 = sld [smem:[#allocation48_spill]] }
 0x129   : > { %p4282_p1 = scmp.ne.s32.totalorder %s4281_s24, 0 }
 0x12a   : > { %s4283_s8 = sld [smem:[#allocation40_spill]] (!%p4282_p1) }
 0x12b   : > { %746 = sbr.rel (%p4282_p1) target bundleno = 2578 (0xa12), region = 84  ;;  %s4284_s9 = sld [smem:[#allocation56_spill]] (!%p4282_p1) }
 0x130   : > { %s3804_s12 = sand.u32 1, %s4283_s8  }
 0x131   : > { %s3807_s23 = sshll.u32 %s3804_s12, 3  ;;  %s749_s4 = scalar_lea.sflag [#allocation6], %s3804_s12 }
 0x132   : > { %s752_s19 = scalar_lea.vmem [#allocation5], %s3807_s23  ;;  %p4285_p2 = scmp.ne.s32.totalorder %s4284_s9, 0 }
 0x134   : > { %3178 = dma.done.wait (%p4285_p2), %s749_s4, 128  }
 0x135   : > { %3180 = vsyncadd (%p4285_p2), %s749_s4, 4294967168  ;;  %s4286_s11 = sld [smem:[#allocation47_spill]] }
 0x136   : > { %s4287_s27 = sld [smem:[#allocation37_spill]] }
 0x137   : > { %s4288_s18 = sld [smem:[#allocation51_spill]] }
 0x13b   : > { %s3816_s2 = sand.u32 1, %s4286_s11  }
 0x13c   : > { %s759_s28 = sand.u32 1, %s4287_s27   ;;  %s758_s25 = scalar_lea.sflag [#allocation9], %s3816_s2 }
 0x13d   : > { %s3819_s15 = sshll.u32 %s759_s28, 3  ;;  %p4289_p4 = scmp.ne.s32.totalorder %s4288_s18, 0 }
 0x13e   : > { %s761_s26 = scalar_lea.vmem [#allocation8], %s3819_s15 }
 0x13f   : > { %3182 = dma.done.wait (%p4289_p4), %s758_s25, 128  }
 0x140   : > { %3184 = vsyncadd (%p4289_p4), %s758_s25, 4294967168  ;;  %s770_s16 = scalar_lea.vmem [#allocation10], %s3807_s23 }
 0x141   : > { %3186 = dma.done.wait (%p4285_p2), %s758_s25, 128  }
 0x142   : > { %3188 = vsyncadd (%p4285_p2), %s758_s25, 4294967168  ;;  %s4290_s14 = sld [smem:[#allocation35_spill]]  ;;  %s776_s10 = scalar_lea.sflag [#allocation12], %s3816_s2 }
 0x143   : > { %s4291_s5 = sld [smem:[#allocation53_spill]] }
 0x148   : > { %s777_s30 = sand.u32 1, %s4290_s14  }
 0x149   : > { %s3833_s21 = sshll.u32 %s777_s30, 3  ;;  %p4292_p6 = scmp.ne.s32.totalorder %s4291_s5, 0 }
 0x14a   : > { %s779_s3 = scalar_lea.vmem [#allocation11], %s3833_s21 }
 0x14b   : > { %3190 = dma.done.wait (%p4292_p6), %s776_s10, 128  }
 0x14c   : > { %3192 = vsyncadd (%p4292_p6), %s776_s10, 4294967168  ;;  %s788_s29 = scalar_lea.vmem [#allocation13], %s3819_s15 }
 0x14d   : > { %3194 = dma.done.wait (%p4289_p4), %s776_s10, 128  }
 0x14e   : > { %3196 = vsyncadd (%p4289_p4), %s776_s10, 4294967168  ;;  %s794_s0 = scalar_lea.sflag [#allocation15], %s3816_s2  ;;  %s797_s7 = scalar_lea.vmem [#allocation14], %s3807_s23 }
 0x14f   : > { %3198 = dma.done.wait (%p4285_p2), %s794_s0, 128  }
 0x150   : > { %3200 = vsyncadd (%p4285_p2), %s794_s0, 4294967168  ;;  %s806_s20 = scalar_lea.vmem [#allocation16], %s3833_s21 }
 0x151   : > { %3202 = dma.done.wait (%p4292_p6), %s794_s0, 128  }
 0x152   : > { %3204 = vsyncadd (%p4292_p6), %s794_s0, 4294967168  ;;  %s812_s22 = scalar_lea.sflag [#allocation18], %s3816_s2  ;;  %s814_s13 = scalar_lea.vmem [#allocation17], %s3804_s12 }
 0x153   : > { %3206 = dma.done.wait (%p4285_p2), %s812_s22, 16  }
 0x154   : > { %3208 = vsyncadd (%p4285_p2), %s812_s22, 4294967280  ;;  %p4293_p0 = scmp.eq.s32.totalorder %s4286_s11, 0 }
 0x156   : > { %3210 = dma.done.wait (%p4293_p0), [#allocation18], 256   ;;  %p4294_p8 = pmov %p4293_p0 }
 0x157   : > { %p4295_p10 = pmov %p4293_p0 }
 0x158   : > { %3212 = vsyncadd (%p4294_p8), [#allocation18], 4294967040 }
 0x159   : > { %3214 = dma.done.wait (%p4295_p10), [#allocation21], 512   ;;  %p4296_p7 = pmov %p4293_p0 }
 0x15a   : > { %v3294_v0 = vmov 0.0   ;;  %vm3295_vm0 = vmmov 0   ;;  %v2753_v1 = vld [vmem:[#allocation19 + $0x8] sm:$0xff]   ;;  %v2754_v2 = vld [vmem:[#allocation19] sm:$0xff]   ;;  %vm952_vm1 = vcmask 261120   ;;  %s4297_s8 = sld [smem:[#allocation68_spill]] }
 0x15b   : > { %3216 = vsyncadd (%p4296_p7), [#allocation21], 4294966784  ;;  %2422 = vmatprep.subr.bf16.mxu0 %v3294_v0  ;;  %2430 = vmatprep.subr.bf16.mxu1 %v3294_v0  ;;  %v932_v3 = vld [vmem:[%s761_s26] sm:$0xff]  ;;  %v999_v4 = vld [vmem:[%s770_s16] sm:$0xff]  ;;  %vm997_vm2 = vcmask 257024   ;;  %s4299_s28 = sld [smem:[#allocation69_spill]] }
 0x15c   : > { %2426 = vmatprep.mubr.msk.bf16.mxu0 %vm3295_vm0, %v3294_v0  ;;  %2434 = vmatprep.mubr.msk.bf16.mxu1 %vm3295_vm0, %v3294_v0  ;;  %v933_v5 = vpack.c.bf16 %v932_v3, %v932_v3  ;;  %v1000_v6 = vpack.c.bf16 %v999_v4, %v999_v4  ;;  %v1046_v8 = vld [vmem:[%s779_s3] sm:$0xff]  ;;  %v1093_v10 = vld [vmem:[%s788_s29] sm:$0xff]  ;;  %s3296_s15 = smov 120   ;;  %vm1351_vm3 = vcmask 64512   ;;  %s4300_s16 = sld [smem:[#allocation71_spill]]  ;;  %vm1427_vm4 = vcmask 1043456  }
 0x15d   : > { %2423 = vmatpush3.bf16.msra.mxu0 %v2753_v1  ;;  %2431 = vmatpush3.bf16.msra.mxu1 %v2753_v1  ;;  %v1047_v11 = vpack.c.bf16 %v1046_v8, %v1046_v8  ;;  %v1094_v12 = vpack.c.bf16 %v1093_v10, %v1093_v10  ;;  %v1158_v13 = vld [vmem:[%s797_s7] sm:$0xff]  ;;  %v1205_v14 = vld [vmem:[%s806_s20] sm:$0xff]  ;;  %vm1401_vm6 = vcmask 195584   ;;  %s3298_s14 = smov 112   ;;  %s3299_s5 = smov 104   ;;  %vm1619_vm7 = vcmask 130112  }
 0x15e   : > { %2424 = vmatprep.subr.bf16.mxu0 %v3294_v0  ;;  %2432 = vmatprep.subr.bf16.mxu1 %v3294_v0  ;;  %v1159_v15 = vpack.c.bf16 %v1158_v13, %v1158_v13  ;;  %v1206_v16 = vpack.c.bf16 %v1205_v14, %v1205_v14  ;;  %v2757_v17 = vld [vmem:[#allocation20 + $0x8] sm:$0xff]   ;;  %v2758_v18 = vld [vmem:[#allocation20] sm:$0xff]   ;;  %s3300_s30 = smov 16   ;;  %s3301_s21 = smov 8   ;;  %vm1765_vm8 = vcmask 195712   ;;  %vm1911_vm9 = vcmask 261312  }
 0x15f   : > { %v1252_v19 = vld [vmem:[%s752_s19] sm:$0xff]  ;;  %s4298_s19 = sld [smem:[#allocation67_spill]]  ;;  %s3302_s29 = smov 24  }
 0x160   : > { %v2755_v7 = vld [vmem:[%s4297_s8 + $0x8] sm:$0xff]   ;;  %v2756_v9 = vld [vmem:[%s4297_s8] sm:$0xff]   ;;  %v1258_v20 = vpack.c.bf16 %v1252_v19, %v1252_v19  ;;  %s4301_s10 = sld [smem:[#allocation43_spill]]  ;;  %s908_s9 = scalar_lea.vmem [#allocation23], %s3807_s23 }
 0x161   : > { %2425 = vmatpush3.bf16.msra.mxu0 %v2754_v2  ;;  %2433 = vmatpush3.bf16.msra.mxu1 %v2754_v2  ;;  %v2328_v36 = vld [vmem:[%s4299_s28] ss:$0 sm:$0xff]  ;;  %s4302_s3 = sld [smem:[#allocation42_spill]]  ;;  %s1998_s4 = sshll.u32 %s908_s9, 4  ;;  %s4052_s4 = int_to_ptr.vmem [resolvable:$true] %s1998_s4 }
 0x162   : > { %2438 = vmatprep.subr.bf16.mxu0 %v3294_v0  ;;  %2446 = vmatprep.subr.bf16.mxu1 %v3294_v0  ;;  %v2334_v58 = vld [vmem:[%s4300_s16] ss:$0 sm:$0xff]  ;;  %s4303_s7 = sld [smem:[#allocation57_spill]]  ;;  %s1983_s28 = scalar_lea.sflag [#allocation7], %s3804_s12 }
 0x163   : > { %s4304_s17 = sld [smem:[#allocation73_spill]]  ;;  %s3303_s23 = smov [#allocation23]  }
 0x164   : > { %2427 = vmatmul.mubr.msk.bf16.vlgmr.msra.gmra.mxu0 %vm952_vm1, %v933_v5  ;;  %2435 = vmatmul.mubr.msk.bf16.vlgmr.msra.gmra.mxu1 %vm952_vm1, %v1000_v6  ;;  %s3099_s25 = sshll.u32 %s3303_s23, 4  ;;  %s3100_s25 = int_to_ptr.vmem [resolvable:$false] %s3099_s25 }
 0x165   : > { %2439 = vmatpush3.bf16.msra.mxu0 %v2753_v1  ;;  %2442 = vmatprep.mubr.msk.bf16.mxu0 %vm3295_vm0, %v3294_v0  ;;  %v2322_v21 = vld [vmem:[%s4298_s19] ss:$0 sm:$0xff]  ;;  %s4305_s19 = sld [smem:[#allocation74_spill]]  ;;  %s3101_s26 = scalar_lea.vmem %s3100_s25, 256 }
 0x166   : > { %2440 = vmatprep.subr.bf16.mxu0 %v3294_v0  ;;  %2447 = vmatpush3.bf16.msra.mxu1 %v2755_v7  ;;  %s2370_s0 = sshll.u32 %s4301_s10, 1  ;;  %p3102_p5 = scmp.lt.s32.totalorder %s4052_s4, %s3100_s25 }
 0x167   : > { %2448 = vmatprep.subr.bf16.mxu1 %v3294_v0  ;;  %2450 = vmatprep.mubr.msk.bf16.mxu1 %vm3295_vm0, %v3294_v0  ;;  %s1994_s20 = sadd.s32 %s4302_s3, %s2370_s0 }
 0x168   : > { %s2371_s24 = sshll.u32 %s1994_s20, 7  ;;  %p4307_p9 = scmp.ne.s32.totalorder %s4303_s7, 0 }
 0x169   : > { %2441 = vmatpush3.bf16.msra.mxu0 %v2754_v2 }
 0x16a   : > { %2449 = vmatpush3.bf16.msra.mxu1 %v2756_v9  ;;  %2454 = vmatprep.subr.bf16.mxu0 %v3294_v0 }
 0x16b   : > { %2462 = vmatprep.subr.bf16.mxu1 %v3294_v0  ;;  %s4306_s2 = smov %s4305_s19  ;;  %s4050_s18 = scalar_lea.hbm %s4305_s19, %s2371_s24 }
 0x16c   : > { %2443 = vmatmul.mubr.msk.bf16.vlgmr.msra.gmra.mxu0 %vm952_vm1, %v1047_v11  ;;  %v1321_v11 = vlaneseq }
 0x16d   : > { %2451 = vmatmul.mubr.msk.bf16.vlgmr.msra.gmra.mxu1 %vm952_vm1, %v1094_v12  ;;  %2455 = vmatpush3.bf16.msra.mxu0 %v2755_v7 }
 0x16e   : > { %2463 = vmatpush3.bf16.msra.mxu1 %v2755_v7  ;;  %2456 = vmatprep.subr.bf16.mxu0 %v3294_v0  ;;  %v1322_v12 = vshrl.u32 %v1321_v11, 7  ;;  %v1324_v13 = vand.u32 127, %v1321_v11 }
 0x16f   : > { %2464 = vmatprep.subr.bf16.mxu1 %v3294_v0  ;;  %2458 = vmatprep.mubr.msk.bf16.mxu0 %vm3295_vm0, %v3294_v0 }
 0x170   : > { %2466 = vmatprep.mubr.msk.bf16.mxu1 %vm3295_vm0, %v3294_v0  ;;  %v1325_v14 = vsub.s32 %v1324_v13, %v1322_v12 }
 0x171   : > { %2457 = vmatpush3.bf16.msra.mxu0 %v2756_v9 }
 0x172   : > { %2465 = vmatpush3.bf16.msra.mxu1 %v2756_v9  ;;  %2470 = vmatprep.subr.bf16.mxu0 %v3294_v0 }
 0x173   : > { %2478 = vmatprep.subr.bf16.mxu1 %v3294_v0 }
 0x174   : > { %2459 = vmatmul.mubr.msk.bf16.vlgmr.msra.gmra.mxu0 %vm952_vm1, %v1159_v15  ;;  %v2338_v15 = vadd.s32 4294967288, %v1325_v14 }
 0x175   : > { %2467 = vmatmul.mubr.msk.bf16.vlgmr.msra.gmra.mxu1 %vm952_vm1, %v1206_v16  ;;  %2471 = vmatpush3.bf16.msra.mxu0 %v2757_v17 }
 0x176   : > { %2472 = vmatprep.subr.bf16.mxu0 %v3294_v0  ;;  %2474 = vmatprep.mubr.msk.bf16.mxu0 %vm3295_vm0, %v3294_v0  ;;  %v1328_v16 = vsub.s32 0, %v2338_v15 }
 0x177   : > { %2482 = vmatprep.mubr.msk.bf16.mxu1 %vm3295_vm0, %v3294_v0 }
 0x178   : > { %v2339_v17 = vmin.u32 %v2338_v15, %v1328_v16 }
 0x179   : > { %2473 = vmatpush3.bf16.msra.mxu0 %v2758_v18  ;;  %v3297_v18 = vmov -1e+09  }
 0x17a   : > { %2486 = vmatprep.subr.bf16.mxu0 %v3294_v0  ;;  %vm1330_vm5 = vcmp.le.s32.totalorder %v2339_v17, 3 }
 0x17b   : > { %v1331_v19 = vsel %vm1330_vm5, 0.0, %v3297_v18 }
 0x17c   : > { %2475 = vmatmul.mubr.msk.bf16.vlgmr.msra.gmra.mxu0 %vm952_vm1, %v1258_v20  ;;  %v2340_v20 = vld [vmem:[%s814_s13] ss:$0 sm:$0xff] }
 0x17d   : > { %2490 = vmatprep.mubr.msk.bf16.mxu0 %vm3295_vm0, %v3294_v0 }
 0x224   : > { %v990_v22 = vpop.f32.mrf.mxu0  ;;  %v1038_v23 = vpop.f32.mrf.mxu1 }
 0x225   : > { %v991_v24 = vadd.f32 %v2322_v21, %v990_v22  ;;  %v1039_v25 = vadd.f32 %v2322_v21, %v1038_v23 }
 0x226   : > { %v2428_v26 = vpop.f32.mrf.mxu0  ;;  %v2436_v27 = vpop.f32.mrf.mxu1 }
 0x227   : > { %v996_v28 = vpack.c.bf16 %v991_v24, %v991_v24  ;;  %v1044_v29 = vpack.c.bf16 %v1039_v25, %v1039_v25 }
 0x228   : > { %v993_v30 = vpop.f32.mrf.mxu0  ;;  %v1041_v31 = vpop.f32.mrf.mxu1 }
 0x229   : > { %998 = vst.msk [vmem:[#allocation2] sm:$0xf] %vm997_vm2, %v996_v28  ;;  %1045 = vst.msk [vmem:[#allocation2 + $0x4] sm:$0xf] %vm997_vm2, %v1044_v29 }
 0x22a   : > { %v2429_v32 = vpop.f32.mrf.mxu0  ;;  %v2437_v33 = vpop.f32.mrf.mxu1 }
 0x22c   : > { %v1085_v34 = vpop.f32.mrf.mxu0 }
 0x22d   : > { %v1086_v35 = vadd.f32 %v2322_v21, %v1085_v34  ;;  %v1150_v37 = vpop.f32.mrf.mxu1  ;;  %v3961_v21 = vadd.f32 %v2340_v20, %v1331_v19 }
 0x22e   : > { %v2444_v38 = vpop.f32.mrf.mxu0  ;;  %v1151_v39 = vadd.f32 %v2328_v36, %v1150_v37 }
 0x22f   : > { %v1091_v40 = vpack.c.bf16 %v1086_v35, %v1086_v35  ;;  %v2452_v41 = vpop.f32.mrf.mxu1 }
 0x230   : > { %v1088_v42 = vpop.f32.mrf.mxu0  ;;  %v1156_v43 = vpack.c.bf16 %v1151_v39, %v1151_v39  ;;  %v2759_v44 = vld [vmem:[#allocation2] sm:$0xff]  }
 0x231   : > { %1092 = vst.msk [vmem:[#allocation2 + $0x8] sm:$0xf] %vm997_vm2, %v1091_v40  ;;  %v1153_v45 = vpop.f32.mrf.mxu1  ;;  %1488 = vrot.lane.b32.xlu1 %v2759_v44, %s3296_s15  ;;  %v2761_v3 = vld [vmem:[#allocation2] sm:$0xff]  }
 0x232   : > { %v2445_v46 = vpop.f32.mrf.mxu0  ;;  %1157 = vst.msk [vmem:[#allocation3] sm:$0xf] %vm997_vm2, %v1156_v43  ;;  %v1356_v7 = vsel %vm1351_vm3, %v2761_v3, 0  ;;  %v2768_v32 = vld [vmem:[#allocation2] sm:$0xff]  }
 0x233   : > { %v2453_v47 = vpop.f32.mrf.mxu1  ;;  %v2771_v35 = vld [vmem:[#allocation2] sm:$0xff]  }
 0x234   : > { %v1197_v48 = vpop.f32.mrf.mxu0 }
 0x235   : > { %v1198_v49 = vadd.f32 %v2328_v36, %v1197_v48  ;;  %v1244_v50 = vpop.f32.mrf.mxu1 }
 0x236   : > { %v1245_v51 = vadd.f32 %v2328_v36, %v1244_v50  ;;  %v2460_v52 = vpop.f32.mrf.mxu0 }
 0x237   : > { %v1203_v53 = vpack.c.bf16 %v1198_v49, %v1198_v49  ;;  %v2468_v54 = vpop.f32.mrf.mxu1 }
 0x238   : > { %v1250_v55 = vpack.c.bf16 %v1245_v51, %v1245_v51  ;;  %v2760_v56 = vld [vmem:[#allocation2 + $0x8] ss:$0 sps:$4 sm:$0xff]   ;;  %v1200_v57 = vpop.f32.mrf.mxu0 }
 0x239   : > { %1204 = vst.msk [vmem:[#allocation3 + $0x4] sm:$0xf] %vm997_vm2, %v1203_v53  ;;  %v1247_v59 = vpop.f32.mrf.mxu1  ;;  %v1359_v60 = vsel %vm1351_vm3, %v2760_v56, 0  ;;  %v2764_v28 = vld [vmem:[#allocation2 + $0x8] ss:$0 sps:$4 sm:$0xff]  }
 0x23a   : > { %1251 = vst.msk [vmem:[#allocation3 + $0x8] sm:$0xf] %vm997_vm2, %v1250_v55  ;;  %v2461_v61 = vpop.f32.mrf.mxu0  ;;  %2479 = vmatpush3.bf16.xpose.msra.mxu1 %v1359_v60  ;;  %v2767_v31 = vld [vmem:[#allocation2 + $0x8] ss:$0 sps:$4 sm:$0xff]  }
 0x23b   : > { %v2469_v62 = vpop.f32.mrf.mxu1  ;;  %2480 = vmatprep.subr.bf16.mxu1 %v3294_v0  ;;  %v2770_v34 = vld [vmem:[#allocation2 + $0x8] ss:$0 sps:$4 sm:$0xff]  }
 0x23c   : > { %v1314_v63 = vpop.f32.mrf.mxu0 }
 0x23d   : > { %v1315_v1 = vadd.f32 %v2334_v58, %v1314_v63 }
 0x23e   : > { %v2476_v2 = vpop.f32.mrf.mxu0 }
 0x23f   : > { %v1320_v4 = vpack.c.bf16 %v1315_v1, %v1315_v1 }
 0x240   : > { %v1317_v5 = vpop.f32.mrf.mxu0  ;;  %v2763_v10 = vld [vmem:[#allocation3] sm:$0xff]  }
 0x241   : > { %v2762_v6 = vld [vmem:[#allocation3 + $0x8] ss:$0 sps:$4 sm:$0xff]   ;;  %1478 = vrot.lane.b32.xlu1 %v1320_v4, %s3296_s15  ;;  %v2766_v30 = vld [vmem:[#allocation3] sm:$0xff]  }
 0x242   : > { %v2477_v8 = vpop.f32.mrf.mxu0  ;;  %2481 = vmatpush3.bf16.xpose.msra.mxu1 %v1356_v7  ;;  %v1429_v9 = vsel %vm1427_vm4, %v2762_v6, 0  ;;  %v2765_v29 = vld [vmem:[#allocation3 + $0x8] ss:$0 sps:$4 sm:$0xff]   ;;  %v2772_v18 = vld [vmem:[#allocation3] sm:$0xff]  }
 0x243   : > { %2487 = vmatpush3.bf16.msra.mxu0 %v1429_v9  ;;  %2502 = vmatprep.subr.bf16.mxu1 %v3294_v0  ;;  %v2769_v33 = vld [vmem:[#allocation3 + $0x8] ss:$0 sps:$4 sm:$0xff]   ;;  %v2774_v20 = vld [vmem:[#allocation3] sm:$0xff]  }
 0x244   : > { %2488 = vmatprep.subr.bf16.mxu0 %v3294_v0  ;;  %v2773_v19 = vld [vmem:[#allocation3 + $0x8] ss:$0 sps:$4 sm:$0xff]  }
 0x247   : > { %2489 = vmatpush3.bf16.msra.mxu0 %v2763_v10 }
 0x248   : > { %2494 = vmatprep.subr.bf16.mxu0 %v3294_v0 }
 0x249   : > { %2483 = vmatmul.mubr.msk.bf16.vlgmr.msra.gmra.mxu1 %vm1351_vm3, %v1320_v4 }
 0x24a   : > { %2506 = vmatprep.mubr.msk.bf16.mxu1 %vm3295_vm0, %v3294_v0 }
 0x2a3   : > { %v1489_v48 = vpop.permute.xlu1 %1488 }
 0x2a4   : > { %v1496_v50 = vsel %vm1351_vm3, %v1489_v48, 0 }
 0x2b3   : > { %v1479_v52 = vpop.permute.xlu1 %1478 }
 0x309   : > { %v1395_v22 = vpop.f32.mrf.mxu1 }
 0x30a   : > { %v1396_v23 = vadd.f32 %v1395_v22, %v3961_v21 }
 0x30b   : > { %v2484_v24 = vpop.f32.mrf.mxu1 }
 0x30c   : > { %v1402_v25 = vsel %vm1401_vm6, %v1396_v23, -inf }
 0x30d   : > { %1403 = vmax.xlane.f32.xlu0 %v1402_v25  ;;  %v1398_v26 = vpop.f32.mrf.mxu1 }
 0x30f   : > { %v2485_v27 = vpop.f32.mrf.mxu1 }
 0x323   : > { %1490 = vrot.lane.b32.xlu0 %v2764_v28, %s3296_s15 }
 0x327   : > { %1564 = vrot.lane.b32.xlu0 %v2765_v29, %s3296_s15 }
 0x32b   : > { %1562 = vrot.lane.b32.xlu0 %v2766_v30, %s3296_s15  ;;  %s3095_s15 = scalar_lea.vmem %s4052_s4, 128 }
 0x32c   : > { %p3096_p12 = scmp.ne.s32.totalorder %s4052_s4, %s3095_s15  ;;  %p3103_p13 = scmp.lt.s32.totalorder %s3101_s26, %s3095_s15 }
 0x32e   : > { %p3097_p3 = pnand %p3096_p12, %p4307_p9  ;;  %p3104_p1 = por %p3103_p13, %p3102_p5 }
 0x32f   : > { %1636 = vrot.lane.b32.xlu0 %v2767_v31, %s3298_s14 }
 0x330   : > { %p3098_p11 = pneg %p3097_p3 }
 0x332   : > { %p3105_p2 = pnand %p3104_p1, %p3098_p11 }
 0x333   : > { %1634 = vrot.lane.b32.xlu0 %v2768_v32, %s3298_s14 }
 0x337   : > { %1624 = vrot.lane.b32.xlu0 %v1320_v4, %s3298_s14 }
 0x33b   : > { %1710 = vrot.lane.b32.xlu0 %v2769_v33, %s3298_s14 }
 0x33f   : > { %1782 = vrot.lane.b32.xlu0 %v2770_v34, %s3299_s5 }
 0x343   : > { %1780 = vrot.lane.b32.xlu0 %v2771_v35, %s3299_s5 }
 0x347   : > { %1770 = vrot.lane.b32.xlu0 %v1320_v4, %s3299_s5 }
 0x396   : > { %v1404_v36 = vpop.xlane.xlu0 %1403 }
 0x397   : > { %v1405_v37 = vsub.f32 %v1396_v23, %v1404_v36 }
 0x399   : > { %v1406_v38 = vmul.f32 1.442695, %v1405_v37 }
 0x39a   : > { %v1491_v39 = vpop.permute.xlu0 %1490 }
 0x39b   : > { %2777 = vpow2.f32 %v1406_v38  ;;  %v1499_v46 = vsel %vm1351_vm3, %v1491_v39, 0 }
 0x39e   : > { %v1565_v40 = vpop.permute.xlu0 %1564 }
 0x39f   : > { %v1571_v41 = vsel %vm1427_vm4, %v1565_v40, 0 }
 0x3a0   : > { %2503 = vmatpush3.bf16.msra.mxu1 %v1571_v41 }
 0x3a1   : > { %2504 = vmatprep.subr.bf16.mxu1 %v3294_v0 }
 0x3a2   : > { %v1563_v42 = vpop.permute.xlu0 %1562 }
 0x3a4   : > { %2505 = vmatpush3.bf16.msra.mxu1 %v1563_v42 }
 0x3a5   : > { %2510 = vmatprep.subr.bf16.mxu1 %v3294_v0 }
 0x3a6   : > { %v1637_v43 = vpop.permute.xlu0 %1636 }
 0x3a7   : > { %v1645_v6 = vsel %vm1351_vm3, %v1637_v43, 0 }
 0x3a8   : > { %v3978_v44 = vpop.eup %2777 }
 0x3a9   : > { %v1411_v45 = vpack.c.bf16 %v3978_v44, %v3978_v44 }
 0x3aa   : > { %v1635_v47 = vpop.permute.xlu0 %1634 }
 0x3ab   : > { %2491 = vmatmul.mubr.msk.bf16.vlgmr.msra.gmra.mxu0 %vm1401_vm6, %v1411_v45  ;;  %v1642_v7 = vsel %vm1351_vm3, %v1635_v47, 0 }
 0x3ac   : > { %2495 = vmatpush3.bf16.xpose.msra.mxu0 %v1499_v46  ;;  %2498 = vmatprep.mubr.msk.bf16.mxu0 %vm3295_vm0, %v3294_v0 }
 0x3ad   : > { %2496 = vmatprep.subr.bf16.mxu0 %v3294_v0 }
 0x3ae   : > { %v1625_v49 = vpop.permute.xlu0 %1624 }
 0x3b2   : > { %v1711_v51 = vpop.permute.xlu0 %1710 }
 0x3b3   : > { %v1717_v53 = vsel %vm1427_vm4, %v1711_v51, 0 }
 0x3b4   : > { %2497 = vmatpush3.bf16.xpose.msra.mxu0 %v1496_v50 }
 0x3b5   : > { %2518 = vmatprep.subr.bf16.mxu0 %v3294_v0 }
 0x3b6   : > { %v1783_v31 = vpop.permute.xlu0 %1782 }
 0x3b7   : > { %v1791_v33 = vsel %vm1351_vm3, %v1783_v31, 0 }
 0x3ba   : > { %v1781_v34 = vpop.permute.xlu0 %1780 }
 0x3bb   : > { %2499 = vmatmul.mubr.msk.bf16.vlgmr.msra.gmra.mxu0 %vm1351_vm3, %v1479_v52  ;;  %v1788_v35 = vsel %vm1351_vm3, %v1781_v34, 0 }
 0x3bc   : > { %2519 = vmatpush3.bf16.msra.mxu0 %v1717_v53  ;;  %2522 = vmatprep.mubr.msk.bf16.mxu0 %vm3295_vm0, %v3294_v0 }
 0x3bd   : > { %2520 = vmatprep.subr.bf16.mxu0 %v3294_v0 }
 0x3be   : > { %v1771_v36 = vpop.permute.xlu0 %1770 }
 0x46b   : > { %v3994_v54 = vpop.f32.mrf.mxu0 }
 0x46d   : > { %v2492_v55 = vpop.f32.mrf.mxu0 }
 0x46f   : > { %v1468_v56 = vpop.f32.mrf.mxu0 }
 0x471   : > { %v2493_v57 = vpop.f32.mrf.mxu0 }
 0x47b   : > { %v1535_v58 = vpop.f32.mrf.mxu0 }
 0x47c   : > { %v1536_v59 = vadd.f32 %v1535_v58, %v3961_v21  ;;  %v1408_v58 = vsel %vm1401_vm6, %v3978_v44, 0.0 }
 0x47d   : > { %v2500_v60 = vpop.f32.mrf.mxu0 }
 0x47e   : > { %v1541_v61 = vsel %vm1401_vm6, %v1536_v59, -inf }
 0x47f   : > { %1542 = vmax.xlane.f32.xlu1 %v1541_v61  ;;  %v1538_v62 = vpop.f32.mrf.mxu0 }
 0x481   : > { %v2501_v63 = vpop.f32.mrf.mxu0 }
 0x508   : > { %v1543_v1 = vpop.xlane.xlu1 %1542 }
 0x509   : > { %v1544_v2 = vsub.f32 %v1536_v59, %v1543_v1 }
 0x50b   : > { %v1545_v3 = vmul.f32 1.442695, %v1544_v2 }
 0x50d   : > { %2779 = vpow2.f32 %v1545_v3 }
 0x51a   : > { %v2780_v4 = vpop.eup %2779 }
 0x51b   : > { %v1550_v5 = vpack.c.bf16 %v2780_v4, %v2780_v4  ;;  %v1547_v22 = vsel %vm1401_vm6, %v2780_v4, 0.0  ;;  %v2775_v4 = vld [vmem:[#allocation22 + $0x8] sm:$0xff]  }
 0x51d   : > { %2507 = vmatmul.mubr.msk.bf16.vlgmr.msra.gmra.mxu1 %vm1401_vm6, %v1550_v5  ;;  %v2776_v5 = vld [vmem:[#allocation22] sm:$0xff]  }
 0x51e   : > { %2511 = vmatpush3.bf16.xpose.msra.mxu1 %v1645_v6  ;;  %2514 = vmatprep.mubr.msk.bf16.mxu1 %vm3295_vm0, %v3294_v0 }
 0x51f   : > { %2512 = vmatprep.subr.bf16.mxu1 %v3294_v0 }
 0x526   : > { %2513 = vmatpush3.bf16.xpose.msra.mxu1 %v1642_v7 }
 0x527   : > { %2534 = vmatprep.subr.bf16.mxu1 %v3294_v0 }
 0x52d   : > { %2515 = vmatmul.mubr.msk.bf16.vlgmr.msra.gmra.mxu1 %vm1351_vm3, %v1625_v49 }
 0x52e   : > { %2538 = vmatprep.mubr.msk.bf16.mxu1 %vm3295_vm0, %v3294_v0 }
 0x5dd   : > { %v4008_v8 = vpop.f32.mrf.mxu1 }
 0x5df   : > { %v2508_v9 = vpop.f32.mrf.mxu1 }
 0x5e1   : > { %v1610_v10 = vpop.f32.mrf.mxu1 }
 0x5e3   : > { %v2509_v11 = vpop.f32.mrf.mxu1 }
 0x5ed   : > { %v1681_v12 = vpop.f32.mrf.mxu1 }
 0x5ee   : > { %v1682_v13 = vadd.f32 %v1681_v12, %v3961_v21 }
 0x5ef   : > { %v2516_v14 = vpop.f32.mrf.mxu1 }
 0x5f0   : > { %v1687_v15 = vsel %vm1401_vm6, %v1682_v13, -inf }
 0x5f1   : > { %1688 = vmax.xlane.f32.xlu1 %v1687_v15  ;;  %v1684_v16 = vpop.f32.mrf.mxu1 }
 0x5f3   : > { %v2517_v17 = vpop.f32.mrf.mxu1 }
 0x602   : > { %1708 = vrot.lane.b32.xlu1 %v2772_v18, %s3298_s14 }
 0x606   : > { %1856 = vrot.lane.b32.xlu1 %v2773_v19, %s3299_s5 }
 0x60a   : > { %1854 = vrot.lane.b32.xlu1 %v2774_v20, %s3299_s5 }
 0x62e   : > { %1548 = vadd.xlane.f32.xlu1 %v1547_v22 }
 0x67a   : > { %v1689_v23 = vpop.xlane.xlu1 %1688 }
 0x67b   : > { %v1690_v24 = vsub.f32 %v1682_v13, %v1689_v23 }
 0x67d   : > { %v1691_v25 = vmul.f32 1.442695, %v1690_v24 }
 0x67e   : > { %v1709_v26 = vpop.permute.xlu1 %1708 }
 0x67f   : > { %2781 = vpow2.f32 %v1691_v25  ;;  %2521 = vmatpush3.bf16.msra.mxu0 %v1709_v26 }
 0x680   : > { %2526 = vmatprep.subr.bf16.mxu0 %v3294_v0 }
 0x682   : > { %v1857_v27 = vpop.permute.xlu1 %1856 }
 0x683   : > { %v1863_v28 = vsel %vm1427_vm4, %v1857_v27, 0 }
 0x684   : > { %2535 = vmatpush3.bf16.msra.mxu1 %v1863_v28 }
 0x685   : > { %2536 = vmatprep.subr.bf16.mxu1 %v3294_v0 }
 0x686   : > { %v1855_v29 = vpop.permute.xlu1 %1854 }
 0x688   : > { %2537 = vmatpush3.bf16.msra.mxu1 %v1855_v29 }
 0x689   : > { %2542 = vmatprep.subr.bf16.mxu1 %v3294_v0 }
 0x68c   : > { %v2782_v30 = vpop.eup %2781 }
 0x68d   : > { %v1696_v32 = vpack.c.bf16 %v2782_v30, %v2782_v30  ;;  %v1693_v48 = vsel %vm1401_vm6, %v2782_v30, 0.0 }
 0x68f   : > { %2523 = vmatmul.mubr.msk.bf16.vlgmr.msra.gmra.mxu0 %vm1401_vm6, %v1696_v32 }
 0x690   : > { %2527 = vmatpush3.bf16.xpose.msra.mxu0 %v1791_v33  ;;  %2530 = vmatprep.mubr.msk.bf16.mxu0 %vm3295_vm0, %v3294_v0 }
 0x691   : > { %2528 = vmatprep.subr.bf16.mxu0 %v3294_v0 }
 0x698   : > { %2529 = vmatpush3.bf16.xpose.msra.mxu0 %v1788_v35 }
 0x69f   : > { %2531 = vmatmul.mubr.msk.bf16.vlgmr.msra.gmra.mxu0 %vm1351_vm3, %v1771_v36 }
 0x6b7   : > { %v1549_v59 = vpop.xlane.xlu1 %1548 }
 0x74f   : > { %v1753_v37 = vpop.f32.mrf.mxu0 }
 0x751   : > { %v2524_v38 = vpop.f32.mrf.mxu0 }
 0x753   : > { %v1756_v39 = vpop.f32.mrf.mxu0 }
 0x755   : > { %v2525_v40 = vpop.f32.mrf.mxu0 }
 0x75f   : > { %v1827_v41 = vpop.f32.mrf.mxu0 }
 0x760   : > { %v1828_v42 = vadd.f32 %v1827_v41, %v3961_v21 }
 0x761   : > { %v2532_v43 = vpop.f32.mrf.mxu0 }
 0x762   : > { %v1833_v45 = vsel %vm1401_vm6, %v1828_v42, -inf }
 0x763   : > { %1834 = vmax.xlane.f32.xlu0 %v1833_v45  ;;  %v1830_v46 = vpop.f32.mrf.mxu0 }
 0x765   : > { %v2533_v47 = vpop.f32.mrf.mxu0 }
 0x767   : > { %1694 = vadd.xlane.f32.xlu0 %v1693_v48 }
 0x7ec   : > { %v1835_v49 = vpop.xlane.xlu0 %1834 }
 0x7ed   : > { %v1836_v50 = vsub.f32 %v1828_v42, %v1835_v49 }
 0x7ef   : > { %v1837_v51 = vmul.f32 1.442695, %v1836_v50 }
 0x7f0   : > { %v1695_v52 = vpop.xlane.xlu0 %1694 }
 0x7f1   : > { %2783 = vpow2.f32 %v1837_v51 }
 0x7f2   : > { %2785 = vrcp.f32 %v1695_v52 }
 0x7f3   : > { %2787 = vrcp.f32 %v1549_v59 }
 0x7fe   : > { %v2784_v53 = vpop.eup %2783 }
 0x7ff   : > { %v2786_v55 = vpop.eup %2785  ;;  %v1839_v56 = vsel %vm1401_vm6, %v2784_v53, 0.0  ;;  %v1842_v21 = vpack.c.bf16 %v2784_v53, %v2784_v53 }
 0x800   : > { %1840 = vadd.xlane.f32.xlu0 %v1839_v56  ;;  %v1760_v57 = vmul.f32 %v2786_v55, %v1753_v37  ;;  %v2788_v60 = vpop.eup %2787 }
 0x801   : > { %2539 = vmatmul.mubr.msk.bf16.vlgmr.msra.gmra.mxu1 %vm1401_vm6, %v1842_v21  ;;  %v1614_v61 = vmul.f32 %v2788_v60, %v4008_v8 }
 0x802   : > { %1762 = vrot.lane.b32.xlu1 %v1760_v57, %s3300_s30  ;;  %2546 = vmatprep.mubr.msk.bf16.mxu1 %vm3295_vm0, %v3294_v0 }
 0x803   : > { %2543 = vmatpush3.bf16.msra.mxu1 %v2775_v4 }
 0x804   : > { %1409 = vadd.xlane.f32.xlu0 %v1408_v58  ;;  %2544 = vmatprep.subr.bf16.mxu1 %v3294_v0  ;;  %v2365_v0 = vld [vmem:[%s4304_s17] ss:$0 sm:$0xff] }
 0x807   : > { %2545 = vmatpush3.bf16.msra.mxu1 %v2776_v5 }
 0x81a   : > { %1616 = vrot.lane.b32.xlu0 %v1614_v61, %s3301_s21 }
 0x874   : > { %v1763_v44 = vpop.permute.xlu1 %1762 }
 0x889   : > { %v1841_v62 = vpop.xlane.xlu0 %1840 }
 0x88d   : > { %v1410_v63 = vpop.xlane.xlu0 %1409 }
 0x88e   : > { %2789 = vrcp.f32 %v1410_v63 }
 0x88f   : > { %2791 = vrcp.f32 %v1841_v62 }
 0x891   : > { %v1617_v3 = vpop.permute.xlu0 %1616 }
 0x89b   : > { %v2790_v1 = vpop.eup %2789 }
 0x89c   : > { %v1472_v2 = vmul.f32 %v2790_v1, %v3994_v54  ;;  %v2792_v6 = vpop.eup %2791 }
 0x89e   : > { %1473 = vst.msk [vmem:[#allocation4] sm:$0xff] %vm1351_vm3, %v1472_v2 }
 0x89f   : > { %1620 = vst.msk [vmem:[#allocation4] sm:$0xff] %vm1619_vm7, %v1617_v3 }
 0x8a0   : > { %1766 = vst.msk [vmem:[#allocation4] sm:$0xff] %vm1765_vm8, %v1763_v44 }
 0x8c1   : > { %v1899_v7 = vpop.f32.mrf.mxu1 }
 0x8c2   : > { %v1906_v54 = vmul.f32 %v2792_v6, %v1899_v7 }
 0x8c3   : > { %v2540_v8 = vpop.f32.mrf.mxu1 }
 0x8c4   : > { %1908 = vrot.lane.b32.xlu1 %v1906_v54, %s3302_s29 }
 0x8c5   : > { %v1902_v9 = vpop.f32.mrf.mxu1 }
 0x8c7   : > { %v2541_v10 = vpop.f32.mrf.mxu1 }
 0x936   : > { %v1909_v11 = vpop.permute.xlu1 %1908 }
 0x937   : > { %1912 = vst.msk [vmem:[#allocation4] sm:$0xff] %vm1911_vm9, %v1909_v11 }
 0x93e   : > { %v1913_v12 = vld [vmem:[#allocation4] sm:$0xff] }
 0x93f   : > { %v1914_v13 = vpack.c.bf16 %v1913_v12, %v1913_v12 }
 0x941   : > { %2547 = vmatmul.mubr.msk.bf16.vlgmr.msra.gmra.mxu1 %vm952_vm1, %v1914_v13 }
 0xa01   : > { %v1975_v14 = vpop.f32.mrf.mxu1 }
 0xa02   : > { %v1976_v15 = vadd.f32 %v2365_v0, %v1975_v14 }
 0xa03   : > { %v2548_v16 = vpop.f32.mrf.mxu1 }
 0xa04   : > { %1981 = vst.msk [vmem:[%s908_s9] sm:$0xff] %vm952_vm1, %v1976_v15 }
 0xa05   : > { %v1978_v17 = vpop.f32.mrf.mxu1 }
 0xa06   : > { %3108 = shalt.err (!%p3105_p2)
}
 0xa07   : > { %s3109_s16 = scalar_lea.hbm %s4050_s18, 128  ;;  %s3113_s5 = scalar_lea.hbm %s4306_s2, 512 }
 0xa08   : > { %p3110_p4 = scmp.ne.s32.totalorder %s4050_s18, %s3109_s16  ;;  %p3114_p8 = scmp.lt.s32.totalorder %s4050_s18, %s4306_s2 }
 0xa09   : > { %p3115_p10 = scmp.lt.s32.totalorder %s3113_s5, %s3109_s16 }
 0xa0a   : > { %p3111_p6 = pnand %p3110_p4, %p4307_p9 }
 0xa0b   : > { %p3116_p7 = por %p3115_p10, %p3114_p8 }
 0xa0c   : > { %p3112_p0 = pneg %p3111_p6 }
 0xa0e   : > { %p3117_p12 = pnand %p3116_p7, %p3112_p0 }
 0xa10   : > { %3120 = shalt.err (!%p3117_p12)
}
 0xa11   : > { %2578 = dma.vmem_to_hbm [thread:$0]  (%p4307_p9), %s4052_s4, 128, %s4050_s18, %s1983_s28   ;;  %v2549_v18 = vpop.f32.mrf.mxu1 }
 0xa12 PF: > { %s4308_s10 = sld [smem:[#allocation46_spill]] }
 0xa13   : > { %s4309_s3 = sld [smem:[#allocation39_spill]] }
 0xa14   : > { %s4310_s29 = sld [smem:[#allocation58_spill]] }
 0xa18   : > { %p2626_p3 = scmp.ge.s32.totalorder %s4308_s10, 2 }
 0xa19   : > { %s2010_s0 = sand.u32 1, %s4309_s3  }
 0xa1a   : > { %p4311_p11 = scmp.ne.s32.totalorder %s4310_s29, 0  ;;  %s2011_s20 = scalar_lea.sflag [#allocation7], %s2010_s0 }
 0xa1c   : > { %p2616_p5 = pnand %p2626_p3, %p4311_p11 }
 0xa1e   : > { %p2617_p13 = pneg %p2616_p5 }
 0xa20   : > { %3218 = dma.done.wait (%p2617_p13), %s2011_s20, 128  }
 0xa21   : > { %3220 = vsyncadd (%p2617_p13), %s2011_s20, 4294967168  ;;  %s45_s19 = sadd.s32 1, %s4308_s10   ;;  %s4313_s21 = sld [smem:[#allocation35_spill]] }
 0xa22   : > { %p4081_p1 = scmp.ge.s32.totalorder %s45_s19, 6   ;;  %s4314_s22 = sld [smem:[#allocation36_spill]] }
 0xa23   : > { %s4315_s23 = sld [smem:[#allocation54_spill]] }
 0xa24   : > { %s4316_s24 = sld [smem:[#allocation37_spill]] }
 0xa25   : > { %s4317_s25 = sld [smem:[#allocation38_spill]] }
 0xa26   : > { %s4318_s26 = sld [smem:[#allocation52_spill]] }
 0xa27   : > { %s4319_s27 = sld [smem:[#allocation40_spill]] }
 0xa28   : > { %s4320_s28 = sld [smem:[#allocation41_spill]] }
 0xa29   : > { %s4321_s29 = sld [smem:[#allocation55_spill]]  ;;  %44 = sbr.rel (!%p4081_p1) target bundleno = 36 (0x24), region = 226 }
 0xa2a   : > { %s4322_s30 = sld [smem:[#allocation44_spill]] }
 0xa2b   : > { %s4323_s0 = sld [smem:[#allocation45_spill]] }
 0xa2c   : > { %s4324_s17 = sld [smem:[#allocation49_spill]] }
 0xa2d   : > { %s4325_s18 = sld [smem:[#allocation50_spill]] }
 0xa2e   :  { %2016 = vsyncpa [#allocation6], 1 }
 0xa2f   :  { %2018 = vsyncpa [#allocation6 + $0x1], 1 }
 0xa30   :  { %2019 = vsyncpa [#allocation9], 1 }
 0xa31   :  { %2021 = vsyncpa [#allocation9 + $0x1], 1 }
 0xa32   :  { %2022 = vsyncpa [#allocation12], 1 }
 0xa33   :  { %2024 = vsyncpa [#allocation12 + $0x1], 1 }
 0xa34   :  { %2025 = vsyncpa [#allocation15], 1 }
 0xa35   :  { %2027 = vsyncpa [#allocation15 + $0x1], 1 }
 0xa36   :  { %2028 = vsyncpa [#allocation18], 1 }
 0xa37   :  { %2030 = vsyncpa [#allocation18 + $0x1], 1 }
 0xa38   :  { %2031 = vsyncpa [#allocation21], 1 }
 0xa39   :  { %2032 = vsyncpa [#allocation7], 1 }
 0xa3a   :  { %2034 = vsyncpa [#allocation7 + $0x1], 1 }

</bundles_post_ra>
